<compile_context>
chip_gen: v7x
topology: tpu7x:2x2x1
jax: 0.10.0
libtpu: 0.0.40
codegen_flags: <defaults>
</compile_context>

<pallas_src>
import functools

import jax
import jax.numpy as jnp
from jax.experimental import pallas as pl
from jax.experimental.pallas import tpu as pltpu


# --------------------------------------------------------------------------- #
# In-kernel helpers
# --------------------------------------------------------------------------- #
def _gather_tap(y, shift):
    """tap[:, p] = y[:, (p + shift) % L]  (wrapped positions get masked later).

    Implemented as two static lane slices + concat (unambiguous semantics;
    equivalent to a lane rotate -- pltpu.roll could replace it as an XLU
    micro-opt once its direction is validated on hardware).
    """
    if shift == 0:
        return y
    L = y.shape[-1]
    s = shift % L
    return jnp.concatenate([y[:, s:], y[:, :s]], axis=1)


def _gn_bias_relu(z, bias_col, gamma_col, beta_col, num_groups, hw, eps=1e-5):
    """ReLU(GroupNorm(z + bias)) on a merged (C, Nb*hw) slab, per-sample stats.

    `z` is the conv output WITHOUT bias; the bias is folded exactly into the
    statistics and the affine, so no full-slab bias add is needed.
    Channels live on sublanes; samples are contiguous hw-sized lane segments.
    """
    C, L = z.shape
    Nb = L // hw
    G = num_groups
    cg = C // G
    inv_cnt = 1.0 / float(hw * cg)
    hwf = float(hw)

    zz = z * z

    # Per-channel, per-sample sums via static (128-aligned) lane-segment
    # reductions -> (C, Nb).  Exact f32, no MXU involved.
    def seg_sums(v):
        cols = [jnp.sum(v[:, s * hw:(s + 1) * hw], axis=1, keepdims=True)
                for s in range(Nb)]
        return cols[0] if Nb == 1 else jnp.concatenate(cols, axis=1)

    s1z = seg_sums(z)                                       # (C, Nb) sum(z)
    s2z = seg_sums(zz)                                      # (C, Nb) sum(z^2)
    # Fold the conv bias into the per-channel sums (exact):
    s1 = s1z + bias_col * hwf
    s2 = s2z + 2.0 * bias_col * s1z + (bias_col * bias_col) * hwf

    # Per-group statistics on tiny (C, Nb) columns -- runs once per grid step.
    mean_parts, inv_parts = [], []
    for g in range(G):
        lo, hi = g * cg, (g + 1) * cg
        m = jnp.sum(s1[lo:hi, :], axis=0, keepdims=True) * inv_cnt   # (1, Nb)
        q = jnp.sum(s2[lo:hi, :], axis=0, keepdims=True) * inv_cnt   # (1, Nb)
        inv = jax.lax.rsqrt(jnp.maximum(q - m * m, 0.0) + eps)
        mean_parts.append(jnp.broadcast_to(m, (cg, Nb)))
        inv_parts.append(jnp.broadcast_to(inv, (cg, Nb)))
    mean_cn = jnp.concatenate(mean_parts, axis=0)                    # (C, Nb)
    inv_cn = jnp.concatenate(inv_parts, axis=0)                      # (C, Nb)

    a_cn = inv_cn * gamma_col                                        # (C, Nb)
    b_cn = beta_col + (bias_col - mean_cn) * a_cn                    # (C, Nb)

    # Apply the per-sample affine + ReLU segment by segment (exact f32).
    pieces = []
    for s in range(Nb):
        zs = z[:, s * hw:(s + 1) * hw]
        pieces.append(jnp.maximum(zs * a_cn[:, s:s + 1] + b_cn[:, s:s + 1], 0.0))
    return pieces[0] if Nb == 1 else jnp.concatenate(pieces, axis=1)


# --------------------------------------------------------------------------- #
# Pallas kernel: full bottleneck block on a merged (C, Nb*HW) slab
# --------------------------------------------------------------------------- #
def bottleneck_kernel(x_ref, w1_ref, w2_ref, w3_ref,
                      b1_ref, g1_ref, be1_ref,
                      b2_ref, g2_ref, be2_ref,
                      b3_ref, g3_ref, be3_ref,
                      masks_ref, o_ref, *, num_groups, W, HW):
    Cin, L = x_ref.shape
    C4 = w1_ref.shape[0]
    cdt = w1_ref.dtype                       # MXU operand dtype (bf16 or f32)

    x = x_ref[...].astype(jnp.float32)       # (Cin, L) residual kept in f32
    masks = masks_ref[...]                   # (9, L) f32 boundary masks (tiled)

    # ---- conv1 (1x1): one merged matmul over the whole slab ----------------
    z = jnp.dot(w1_ref[...], x.astype(cdt), preferred_element_type=jnp.float32)
    y = _gn_bias_relu(z, b1_ref[...], g1_ref[...], be1_ref[...], num_groups, HW)

    # ---- conv2 (3x3, pad=1, stride=1): split-K over kernel rows ------------
    # Shift + boundary-mask in f32, one cast per (3*C4, L) row slab, three
    # accumulating K=3*C4 matmuls (keeps the live im2col slab 3x smaller).
    acc = None
    for ky in range(3):
        taps = []
        for kx in range(3):
            dy, dx = ky - 1, kx - 1
            shift = dy * W + dx
            t = _gather_tap(y, shift)
            if shift != 0:
                idx = ky * 3 + kx
                t = t * masks[idx:idx + 1, :]
            taps.append(t)
        row = jnp.concatenate(taps, axis=0).astype(cdt)          # (3*C4, L)
        part = jnp.dot(w2_ref[ky], row, preferred_element_type=jnp.float32)
        acc = part if acc is None else acc + part
    y = _gn_bias_relu(acc, b2_ref[...], g2_ref[...], be2_ref[...], num_groups, HW)

    # ---- conv3 (1x1) --------------------------------------------------------
    z = jnp.dot(w3_ref[...], y.astype(cdt), preferred_element_type=jnp.float32)
    y = _gn_bias_relu(z, b3_ref[...], g3_ref[...], be3_ref[...], num_groups, HW)

    # ---- identity shortcut + ReLU (stride == 1 => no downsample) -----------
    o_ref[...] = jnp.maximum(x + y, 0.0).astype(o_ref.dtype)


# --------------------------------------------------------------------------- #
# Wrapper
# --------------------------------------------------------------------------- #
def bottleneck_forward(x_nchw, params, *, num_groups, samples_per_step=None,
                       compute_dtype=jnp.bfloat16):
    N, Cin, H, W = x_nchw.shape
    HW = H * W
    C4 = params['w1'].shape[0]
    P = params['w3'].shape[0]
    if Cin != P:
        raise ValueError("identity shortcut (stride=1) requires in_planes == planes")

    io_dtype = x_nchw.dtype                   # pass bf16 x for bf16 I/O (halves HBM bytes)
    io_bytes = jnp.dtype(io_dtype).itemsize
    cbytes = jnp.dtype(compute_dtype).itemsize

    # Generation-aware VMEM budget (v5e/v6e: 128 MiB, v7x: 64 MiB per core).
    try:
        vmem_cap = int(pltpu.get_tpu_info().vmem_capacity_bytes)
    except Exception:
        vmem_cap = 64 << 20                   # conservative fallback (v7x per-TC)

    def est_vmem(nb):
        L = nb * HW
        blocks = 2 * io_bytes * L * (Cin + P)                       # dbl-buffered x/out
        consts = 2 * (4 * 9 * L
                      + cbytes * (C4 * Cin + 9 * C4 * C4 + P * C4)
                      + 4 * 6 * max(Cin, P))
        act = L * (4 * (Cin + 2 * P + 5 * C4) + cbytes * (Cin + 3 * C4))
        return blocks + consts + act + (2 << 20)                    # + headroom

    # Auto-pick samples_per_step: as large as the VMEM budget allows while
    # keeping >= 2 grid steps so both v7x TensorCores have work.
    if samples_per_step is None:
        budget = int(0.40 * vmem_cap)
        divs = [d for d in range(1, N + 1) if N % d == 0]
        fits = [d for d in divs if est_vmem(d) <= budget] or [1]
        pref = [d for d in fits if N // d >= 2] or fits
        Nb = max(pref)
    else:
        Nb = int(samples_per_step)
    if N % Nb != 0:
        raise ValueError("batch must be divisible by samples_per_step")

    L = Nb * HW
    if (L % 128 != 0) and (Nb != N):
        raise ValueError("samples_per_step * H*W should be a multiple of 128")

    # Always set the scoped-VMEM limit (v5e default is only 16 MiB); cap at
    # 75% of the per-core capacity so the compiler keeps internal scratch.
    vmem_limit = int(min(0.75 * vmem_cap,
                         max(1.5 * est_vmem(Nb), float(32 << 20))))

    # Channel-major, lane-dense layout (C, N*HW): one-time layout plumbing
    # outside the kernel; every block is a large multiple of 128 lanes.
    x = x_nchw.reshape(N, Cin, HW).transpose(1, 0, 2).reshape(Cin, N * HW)

    # Matmul-friendly weight layouts (computed once, wrapper-side).
    w1 = params['w1'][:, :, 0, 0].astype(compute_dtype)             # (C4, Cin)
    w2 = (params['w2'].transpose(2, 0, 3, 1)                        # (ky, o, kx, i)
          .reshape(3, C4, 3 * C4).astype(compute_dtype))            # (3, C4, 3*C4)
    w3 = params['w3'][:, :, 0, 0].astype(compute_dtype)             # (P, C4)

    col = lambda v: v.reshape(-1, 1).astype(jnp.float32)
    b1, b2, b3 = col(params['b1']), col(params['b2']), col(params['b3'])
    g1, be1 = col(params['gn1_w']), col(params['gn1_b'])
    g2, be2 = col(params['gn2_w']), col(params['gn2_b'])
    g3, be3 = col(params['gn3_w']), col(params['gn3_b'])

    # 3x3-conv boundary masks for the 9 taps, tiled across the Nb merged
    # samples (f32 so the mask multiply stays on the f32 VPU path, v5e-safe).
    hh, ww = jnp.meshgrid(jnp.arange(H), jnp.arange(W), indexing='ij')
    rows = []
    for ky in range(3):
        for kx in range(3):
            dy, dx = ky - 1, kx - 1
            valid = ((hh + dy >= 0) & (hh + dy < H) &
                     (ww + dx >= 0) & (ww + dx < W))
            rows.append(valid.reshape(1, HW))
    masks = jnp.tile(jnp.concatenate(rows, axis=0).astype(jnp.float32), (1, Nb))

    def const_spec(a):
        nd = a.ndim
        return pl.BlockSpec(a.shape, lambda n, _nd=nd: (0,) * _nd)

    in_specs = [
        pl.BlockSpec((Cin, L), lambda n: (0, n)),
        const_spec(w1), const_spec(w2), const_spec(w3),
        const_spec(b1), const_spec(g1), const_spec(be1),
        const_spec(b2), const_spec(g2), const_spec(be2),
        const_spec(b3), const_spec(g3), const_spec(be3),
        const_spec(masks),
    ]
    out_specs = pl.BlockSpec((P, L), lambda n: (0, n))

    kernel = functools.partial(bottleneck_kernel, num_groups=num_groups, W=W, HW=HW)
    out = pl.pallas_call(
        kernel,
        out_shape=jax.ShapeDtypeStruct((P, N * HW), io_dtype),
        grid_spec=pltpu.PrefetchScalarGridSpec(
            num_scalar_prefetch=0,
            grid=(N // Nb,),
            in_specs=in_specs,
            out_specs=out_specs,
        ),
        compiler_params=pltpu.CompilerParams(
            dimension_semantics=("parallel",),     # batch slabs across v7x's 2 TCs
            vmem_limit_bytes=vmem_limit),
    )(x, w1, w2, w3, b1, g1, be1, b2, g2, be2, b3, g3, be3, masks)

    # Free-ish layout plumbing back to NCHW.
    return out.reshape(P, N, HW).transpose(1, 0, 2).reshape(N, P, H, W)


# --------------------------------------------------------------------------- #
# Pure-JAX reference (mirrors the PyTorch forward)
# --------------------------------------------------------------------------- #
def ref_forward(x, p, num_groups):
    def conv(x, w, b, pad):
        y = jax.lax.conv_general_dilated(
            x, w, window_strides=(1, 1),
            padding=[(pad, pad), (pad, pad)],
            dimension_numbers=('NCHW', 'OIHW', 'NCHW'))
        return y + b[None, :, None, None]

    def gn(x, gamma, beta, eps=1e-5):
        N, C, H, W = x.shape
        xg = x.reshape(N, num_groups, -1)
        mean = xg.mean(axis=2, keepdims=True)
        var = ((xg - mean) ** 2).mean(axis=2, keepdims=True)
        xn = ((xg - mean) * jax.lax.rsqrt(var + eps)).reshape(N, C, H, W)
        return xn * gamma[None, :, None, None] + beta[None, :, None, None]

    y = jax.nn.relu(gn(conv(x, p['w1'], p['b1'], 0), p['gn1_w'], p['gn1_b']))
    y = jax.nn.relu(gn(conv(y, p['w2'], p['b2'], 1), p['gn2_w'], p['gn2_b']))
    y = jax.nn.relu(gn(conv(y, p['w3'], p['b3'], 0), p['gn3_w'], p['gn3_b']))
    return jax.nn.relu(x + y)


# --------------------------------------------------------------------------- #
if __name__ == "__main__":
    N, H, W = 4, 16, 16
    in_planes = planes = 32          # identity shortcut => in_planes == planes
    C4 = planes // 4                 # 8
    num_groups = planes // 8         # 4

    key = jax.random.PRNGKey(0)
    ks = jax.random.split(key, 13)
    params = {
        'w1': 0.2 * jax.random.normal(ks[0], (C4, in_planes, 1, 1), jnp.float32),
        'b1': 0.1 * jax.random.normal(ks[1], (C4,), jnp.float32),
        'w2': 0.2 * jax.random.normal(ks[2], (C4, C4, 3, 3), jnp.float32),
        'b2': 0.1 * jax.random.normal(ks[3], (C4,), jnp.float32),
        'w3': 0.2 * jax.random.normal(ks[4], (planes, C4, 1, 1), jnp.float32),
        'b3': 0.1 * jax.random.normal(ks[5], (planes,), jnp.float32),
        'gn1_w': 1.0 + 0.1 * jax.random.normal(ks[6], (C4,), jnp.float32),
        'gn1_b': 0.1 * jax.random.normal(ks[7], (C4,), jnp.float32),
        'gn2_w': 1.0 + 0.1 * jax.random.normal(ks[8], (C4,), jnp.float32),
        'gn2_b': 0.1 * jax.random.normal(ks[9], (C4,), jnp.float32),
        'gn3_w': 1.0 + 0.1 * jax.random.normal(ks[10], (planes,), jnp.float32),
        'gn3_b': 0.1 * jax.random.normal(ks[11], (planes,), jnp.float32),
    }
    x = jax.random.normal(ks[12], (N, in_planes, H, W), jnp.float32)
    ref = ref_forward(x, params, num_groups)

    # 1) f32 MXU operands, 1 sample per grid step: structural correctness check.
    out32 = bottleneck_forward(x[:2], params, num_groups=num_groups,
                               samples_per_step=1, compute_dtype=jnp.float32)
    out32 = jax.block_until_ready(out32)
    assert out32.shape == ref[:2].shape
    err32 = float(jnp.max(jnp.abs(out32 - ref[:2])))
    if not (err32 < 2e-2):
        raise SystemExit(f"f32 kernel mismatch vs reference, max_err={err32}")

    # 2) merged-lane slab (auto samples_per_step), bf16 MXU operands, f32 I/O.
    outbf = bottleneck_forward(x, params, num_groups=num_groups,
                               compute_dtype=jnp.bfloat16)
    outbf = jax.block_until_ready(outbf)
    assert outbf.shape == ref.shape
    errbf = float(jnp.max(jnp.abs(outbf - ref)))
    if not (errbf < 2e-1):
        raise SystemExit(f"bf16 kernel mismatch vs reference, max_err={errbf}")

    # 3) bf16 I/O (halves HBM traffic for this bandwidth-bound kernel).
    outio = bottleneck_forward(x.astype(jnp.bfloat16), params,
                               num_groups=num_groups, compute_dtype=jnp.bfloat16)
    outio = jax.block_until_ready(outio)
    assert outio.shape == ref.shape and outio.dtype == jnp.bfloat16
    errio = float(jnp.max(jnp.abs(outio.astype(jnp.float32) - ref)))
    if not (errio < 3e-1):
        raise SystemExit(f"bf16-I/O kernel mismatch vs reference, max_err={errio}")

    print("KERNEL_OK")
</pallas_src>

<mosaic_0001>
module attributes {stable_mosaic.version = 11 : i64} {
  func.func @bottleneck_kernel(%arg0: i32, %arg1: memref<32x256xf32, #tpu.memory_space<vmem>>, %arg2: memref<8x32xf32, #tpu.memory_space<vmem>>, %arg3: memref<3x8x24xf32, #tpu.memory_space<vmem>>, %arg4: memref<32x8xf32, #tpu.memory_space<vmem>>, %arg5: memref<8x1xf32, #tpu.memory_space<vmem>>, %arg6: memref<8x1xf32, #tpu.memory_space<vmem>>, %arg7: memref<8x1xf32, #tpu.memory_space<vmem>>, %arg8: memref<8x1xf32, #tpu.memory_space<vmem>>, %arg9: memref<8x1xf32, #tpu.memory_space<vmem>>, %arg10: memref<8x1xf32, #tpu.memory_space<vmem>>, %arg11: memref<32x1xf32, #tpu.memory_space<vmem>>, %arg12: memref<32x1xf32, #tpu.memory_space<vmem>>, %arg13: memref<32x1xf32, #tpu.memory_space<vmem>>, %arg14: memref<9x256xf32, #tpu.memory_space<vmem>>, %arg15: memref<32x256xf32, #tpu.memory_space<vmem>>) attributes {dimension_semantics = [#tpu.dimension_semantics<parallel>], iteration_bounds = array<i64: 2>, scalar_prefetch = 0 : i64, scratch_operands = 0 : i64, tpu.core_type = #tpu.core_type<tc>, window_params = [{transform_indices = @transform_0, window_bounds = array<i64: 32, 256>}, {pipeline_mode = #tpu.pipeline_mode<synchronous>, transform_indices = @transform_1, window_bounds = array<i64: 8, 32>}, {pipeline_mode = #tpu.pipeline_mode<synchronous>, transform_indices = @transform_2, window_bounds = array<i64: 3, 8, 24>}, {pipeline_mode = #tpu.pipeline_mode<synchronous>, transform_indices = @transform_3, window_bounds = array<i64: 32, 8>}, {pipeline_mode = #tpu.pipeline_mode<synchronous>, transform_indices = @transform_4, window_bounds = array<i64: 8, 1>}, {pipeline_mode = #tpu.pipeline_mode<synchronous>, transform_indices = @transform_5, window_bounds = array<i64: 8, 1>}, {pipeline_mode = #tpu.pipeline_mode<synchronous>, transform_indices = @transform_6, window_bounds = array<i64: 8, 1>}, {pipeline_mode = #tpu.pipeline_mode<synchronous>, transform_indices = @transform_7, window_bounds = array<i64: 8, 1>}, {pipeline_mode = #tpu.pipeline_mode<synchronous>, transform_indices = @transform_8, window_bounds = array<i64: 8, 1>}, {pipeline_mode = #tpu.pipeline_mode<synchronous>, transform_indices = @transform_9, window_bounds = array<i64: 8, 1>}, {pipeline_mode = #tpu.pipeline_mode<synchronous>, transform_indices = @transform_10, window_bounds = array<i64: 32, 1>}, {pipeline_mode = #tpu.pipeline_mode<synchronous>, transform_indices = @transform_11, window_bounds = array<i64: 32, 1>}, {pipeline_mode = #tpu.pipeline_mode<synchronous>, transform_indices = @transform_12, window_bounds = array<i64: 32, 1>}, {pipeline_mode = #tpu.pipeline_mode<synchronous>, transform_indices = @transform_13, window_bounds = array<i64: 9, 256>}, {transform_indices = @transform_14, window_bounds = array<i64: 32, 256>}]} {
    %c0 = arith.constant 0 : index
    %c0_0 = arith.constant 0 : index
    %0 = vector.load %arg1[%c0, %c0_0] : memref<32x256xf32, #tpu.memory_space<vmem>>, vector<32x256xf32>
    %c0_1 = arith.constant 0 : index
    %c0_2 = arith.constant 0 : index
    %1 = vector.load %arg14[%c0_1, %c0_2] : memref<9x256xf32, #tpu.memory_space<vmem>>, vector<9x256xf32>
    %c0_3 = arith.constant 0 : index
    %c0_4 = arith.constant 0 : index
    %2 = vector.load %arg2[%c0_3, %c0_4] : memref<8x32xf32, #tpu.memory_space<vmem>>, vector<8x32xf32>
    %cst = arith.constant dense<0.000000e+00> : vector<8x256xf32>
    %3 = tpu.matmul %2, %0, %cst {dimension_numbers = #tpu.dot_dimension_numbers<[1], [0], [0], [1], [0, 0, 1, 1], [], []>} : vector<8x32xf32>, vector<32x256xf32>, vector<8x256xf32> -> vector<8x256xf32>
    %c0_5 = arith.constant 0 : index
    %c0_6 = arith.constant 0 : index
    %4 = vector.load %arg5[%c0_5, %c0_6] : memref<8x1xf32, #tpu.memory_space<vmem>>, vector<8x1xf32>
    %c0_7 = arith.constant 0 : index
    %c0_8 = arith.constant 0 : index
    %5 = vector.load %arg6[%c0_7, %c0_8] : memref<8x1xf32, #tpu.memory_space<vmem>>, vector<8x1xf32>
    %c0_9 = arith.constant 0 : index
    %c0_10 = arith.constant 0 : index
    %6 = vector.load %arg7[%c0_9, %c0_10] : memref<8x1xf32, #tpu.memory_space<vmem>>, vector<8x1xf32>
    %7 = arith.mulf %3, %3 : vector<8x256xf32>
    %cst_11 = arith.constant dense<0.000000e+00> : vector<8xf32>
    %8 = vector.multi_reduction <add>, %3, %cst_11 [1] : vector<8x256xf32> to vector<8xf32>
    %9 = vector.shape_cast %8 : vector<8xf32> to vector<8x1xf32>
    %cst_12 = arith.constant dense<0.000000e+00> : vector<8xf32>
    %10 = vector.multi_reduction <add>, %7, %cst_12 [1] : vector<8x256xf32> to vector<8xf32>
    %11 = vector.shape_cast %10 : vector<8xf32> to vector<8x1xf32>
    %cst_13 = arith.constant 2.560000e+02 : f32
    %12 = vector.broadcast %cst_13 : f32 to vector<8x1xf32>
    %13 = arith.mulf %4, %12 : vector<8x1xf32>
    %14 = arith.addf %9, %13 : vector<8x1xf32>
    %cst_14 = arith.constant 2.000000e+00 : f32
    %15 = vector.broadcast %cst_14 : f32 to vector<8x1xf32>
    %16 = arith.mulf %15, %4 : vector<8x1xf32>
    %17 = arith.mulf %16, %9 : vector<8x1xf32>
    %18 = arith.addf %11, %17 : vector<8x1xf32>
    %19 = arith.mulf %4, %4 : vector<8x1xf32>
    %cst_15 = arith.constant 2.560000e+02 : f32
    %20 = vector.broadcast %cst_15 : f32 to vector<8x1xf32>
    %21 = arith.mulf %19, %20 : vector<8x1xf32>
    %22 = arith.addf %18, %21 : vector<8x1xf32>
    %23 = vector.extract_strided_slice %14 {offsets = [0, 0], sizes = [2, 1], strides = [1, 1]} : vector<8x1xf32> to vector<2x1xf32>
    %cst_16 = arith.constant dense<0.000000e+00> : vector<1xf32>
    %24 = vector.multi_reduction <add>, %23, %cst_16 [0] : vector<2x1xf32> to vector<1xf32>
    %25 = vector.shape_cast %24 : vector<1xf32> to vector<1x1xf32>
    %cst_17 = arith.constant 0.001953125 : f32
    %26 = vector.broadcast %cst_17 : f32 to vector<1x1xf32>
    %27 = arith.mulf %25, %26 : vector<1x1xf32>
    %28 = vector.extract_strided_slice %22 {offsets = [0, 0], sizes = [2, 1], strides = [1, 1]} : vector<8x1xf32> to vector<2x1xf32>
    %cst_18 = arith.constant dense<0.000000e+00> : vector<1xf32>
    %29 = vector.multi_reduction <add>, %28, %cst_18 [0] : vector<2x1xf32> to vector<1xf32>
    %30 = vector.shape_cast %29 : vector<1xf32> to vector<1x1xf32>
    %cst_19 = arith.constant 0.001953125 : f32
    %31 = vector.broadcast %cst_19 : f32 to vector<1x1xf32>
    %32 = arith.mulf %30, %31 : vector<1x1xf32>
    %33 = arith.mulf %27, %27 : vector<1x1xf32>
    %34 = arith.subf %32, %33 : vector<1x1xf32>
    %cst_20 = arith.constant 0.000000e+00 : f32
    %35 = vector.broadcast %cst_20 : f32 to vector<1x1xf32>
    %36 = arith.maximumf %34, %35 : vector<1x1xf32>
    %cst_21 = arith.constant 9.99999974E-6 : f32
    %37 = vector.broadcast %cst_21 : f32 to vector<1x1xf32>
    %38 = arith.addf %36, %37 : vector<1x1xf32>
    %39 = math.rsqrt %38 : vector<1x1xf32>
    %40 = vector.shape_cast %27 : vector<1x1xf32> to vector<1x1xf32>
    %41 = vector.broadcast %40 : vector<1x1xf32> to vector<2x1xf32>
    %42 = vector.shape_cast %39 : vector<1x1xf32> to vector<1x1xf32>
    %43 = vector.broadcast %42 : vector<1x1xf32> to vector<2x1xf32>
    %44 = vector.extract_strided_slice %14 {offsets = [2, 0], sizes = [2, 1], strides = [1, 1]} : vector<8x1xf32> to vector<2x1xf32>
    %cst_22 = arith.constant dense<0.000000e+00> : vector<1xf32>
    %45 = vector.multi_reduction <add>, %44, %cst_22 [0] : vector<2x1xf32> to vector<1xf32>
    %46 = vector.shape_cast %45 : vector<1xf32> to vector<1x1xf32>
    %cst_23 = arith.constant 0.001953125 : f32
    %47 = vector.broadcast %cst_23 : f32 to vector<1x1xf32>
    %48 = arith.mulf %46, %47 : vector<1x1xf32>
    %49 = vector.extract_strided_slice %22 {offsets = [2, 0], sizes = [2, 1], strides = [1, 1]} : vector<8x1xf32> to vector<2x1xf32>
    %cst_24 = arith.constant dense<0.000000e+00> : vector<1xf32>
    %50 = vector.multi_reduction <add>, %49, %cst_24 [0] : vector<2x1xf32> to vector<1xf32>
    %51 = vector.shape_cast %50 : vector<1xf32> to vector<1x1xf32>
    %cst_25 = arith.constant 0.001953125 : f32
    %52 = vector.broadcast %cst_25 : f32 to vector<1x1xf32>
    %53 = arith.mulf %51, %52 : vector<1x1xf32>
    %54 = arith.mulf %48, %48 : vector<1x1xf32>
    %55 = arith.subf %53, %54 : vector<1x1xf32>
    %cst_26 = arith.constant 0.000000e+00 : f32
    %56 = vector.broadcast %cst_26 : f32 to vector<1x1xf32>
    %57 = arith.maximumf %55, %56 : vector<1x1xf32>
    %cst_27 = arith.constant 9.99999974E-6 : f32
    %58 = vector.broadcast %cst_27 : f32 to vector<1x1xf32>
    %59 = arith.addf %57, %58 : vector<1x1xf32>
    %60 = math.rsqrt %59 : vector<1x1xf32>
    %61 = vector.shape_cast %48 : vector<1x1xf32> to vector<1x1xf32>
    %62 = vector.broadcast %61 : vector<1x1xf32> to vector<2x1xf32>
    %63 = vector.shape_cast %60 : vector<1x1xf32> to vector<1x1xf32>
    %64 = vector.broadcast %63 : vector<1x1xf32> to vector<2x1xf32>
    %65 = vector.extract_strided_slice %14 {offsets = [4, 0], sizes = [2, 1], strides = [1, 1]} : vector<8x1xf32> to vector<2x1xf32>
    %cst_28 = arith.constant dense<0.000000e+00> : vector<1xf32>
    %66 = vector.multi_reduction <add>, %65, %cst_28 [0] : vector<2x1xf32> to vector<1xf32>
    %67 = vector.shape_cast %66 : vector<1xf32> to vector<1x1xf32>
    %cst_29 = arith.constant 0.001953125 : f32
    %68 = vector.broadcast %cst_29 : f32 to vector<1x1xf32>
    %69 = arith.mulf %67, %68 : vector<1x1xf32>
    %70 = vector.extract_strided_slice %22 {offsets = [4, 0], sizes = [2, 1], strides = [1, 1]} : vector<8x1xf32> to vector<2x1xf32>
    %cst_30 = arith.constant dense<0.000000e+00> : vector<1xf32>
    %71 = vector.multi_reduction <add>, %70, %cst_30 [0] : vector<2x1xf32> to vector<1xf32>
    %72 = vector.shape_cast %71 : vector<1xf32> to vector<1x1xf32>
    %cst_31 = arith.constant 0.001953125 : f32
    %73 = vector.broadcast %cst_31 : f32 to vector<1x1xf32>
    %74 = arith.mulf %72, %73 : vector<1x1xf32>
    %75 = arith.mulf %69, %69 : vector<1x1xf32>
    %76 = arith.subf %74, %75 : vector<1x1xf32>
    %cst_32 = arith.constant 0.000000e+00 : f32
    %77 = vector.broadcast %cst_32 : f32 to vector<1x1xf32>
    %78 = arith.maximumf %76, %77 : vector<1x1xf32>
    %cst_33 = arith.constant 9.99999974E-6 : f32
    %79 = vector.broadcast %cst_33 : f32 to vector<1x1xf32>
    %80 = arith.addf %78, %79 : vector<1x1xf32>
    %81 = math.rsqrt %80 : vector<1x1xf32>
    %82 = vector.shape_cast %69 : vector<1x1xf32> to vector<1x1xf32>
    %83 = vector.broadcast %82 : vector<1x1xf32> to vector<2x1xf32>
    %84 = vector.shape_cast %81 : vector<1x1xf32> to vector<1x1xf32>
    %85 = vector.broadcast %84 : vector<1x1xf32> to vector<2x1xf32>
    %86 = vector.extract_strided_slice %14 {offsets = [6, 0], sizes = [2, 1], strides = [1, 1]} : vector<8x1xf32> to vector<2x1xf32>
    %cst_34 = arith.constant dense<0.000000e+00> : vector<1xf32>
    %87 = vector.multi_reduction <add>, %86, %cst_34 [0] : vector<2x1xf32> to vector<1xf32>
    %88 = vector.shape_cast %87 : vector<1xf32> to vector<1x1xf32>
    %cst_35 = arith.constant 0.001953125 : f32
    %89 = vector.broadcast %cst_35 : f32 to vector<1x1xf32>
    %90 = arith.mulf %88, %89 : vector<1x1xf32>
    %91 = vector.extract_strided_slice %22 {offsets = [6, 0], sizes = [2, 1], strides = [1, 1]} : vector<8x1xf32> to vector<2x1xf32>
    %cst_36 = arith.constant dense<0.000000e+00> : vector<1xf32>
    %92 = vector.multi_reduction <add>, %91, %cst_36 [0] : vector<2x1xf32> to vector<1xf32>
    %93 = vector.shape_cast %92 : vector<1xf32> to vector<1x1xf32>
    %cst_37 = arith.constant 0.001953125 : f32
    %94 = vector.broadcast %cst_37 : f32 to vector<1x1xf32>
    %95 = arith.mulf %93, %94 : vector<1x1xf32>
    %96 = arith.mulf %90, %90 : vector<1x1xf32>
    %97 = arith.subf %95, %96 : vector<1x1xf32>
    %cst_38 = arith.constant 0.000000e+00 : f32
    %98 = vector.broadcast %cst_38 : f32 to vector<1x1xf32>
    %99 = arith.maximumf %97, %98 : vector<1x1xf32>
    %cst_39 = arith.constant 9.99999974E-6 : f32
    %100 = vector.broadcast %cst_39 : f32 to vector<1x1xf32>
    %101 = arith.addf %99, %100 : vector<1x1xf32>
    %102 = math.rsqrt %101 : vector<1x1xf32>
    %103 = vector.shape_cast %90 : vector<1x1xf32> to vector<1x1xf32>
    %104 = vector.broadcast %103 : vector<1x1xf32> to vector<2x1xf32>
    %105 = vector.shape_cast %102 : vector<1x1xf32> to vector<1x1xf32>
    %106 = vector.broadcast %105 : vector<1x1xf32> to vector<2x1xf32>
    %107 = tpu.concatenate %41, %62, %83, %104 in 0 : vector<2x1xf32>, vector<2x1xf32>, vector<2x1xf32>, vector<2x1xf32> -> vector<8x1xf32>
    %108 = tpu.concatenate %43, %64, %85, %106 in 0 : vector<2x1xf32>, vector<2x1xf32>, vector<2x1xf32>, vector<2x1xf32> -> vector<8x1xf32>
    %109 = arith.mulf %108, %5 : vector<8x1xf32>
    %110 = arith.subf %4, %107 : vector<8x1xf32>
    %111 = arith.mulf %110, %109 : vector<8x1xf32>
    %112 = arith.addf %6, %111 : vector<8x1xf32>
    %113 = vector.broadcast %109 : vector<8x1xf32> to vector<8x256xf32>
    %114 = arith.mulf %3, %113 : vector<8x256xf32>
    %115 = vector.broadcast %112 : vector<8x1xf32> to vector<8x256xf32>
    %116 = arith.addf %114, %115 : vector<8x256xf32>
    %cst_40 = arith.constant 0.000000e+00 : f32
    %117 = vector.broadcast %cst_40 : f32 to vector<8x256xf32>
    %118 = arith.maximumf %116, %117 : vector<8x256xf32>
    %119 = vector.extract_strided_slice %118 {offsets = [0, 239], sizes = [8, 17], strides = [1, 1]} : vector<8x256xf32> to vector<8x17xf32>
    %120 = vector.extract_strided_slice %118 {offsets = [0, 0], sizes = [8, 239], strides = [1, 1]} : vector<8x256xf32> to vector<8x239xf32>
    %121 = tpu.concatenate %119, %120 in 1 : vector<8x17xf32>, vector<8x239xf32> -> vector<8x256xf32>
    %122 = vector.extract_strided_slice %1 {offsets = [0, 0], sizes = [1, 256], strides = [1, 1]} : vector<9x256xf32> to vector<1x256xf32>
    %123 = vector.broadcast %122 : vector<1x256xf32> to vector<8x256xf32>
    %124 = arith.mulf %121, %123 : vector<8x256xf32>
    %125 = vector.extract_strided_slice %118 {offsets = [0, 240], sizes = [8, 16], strides = [1, 1]} : vector<8x256xf32> to vector<8x16xf32>
    %126 = vector.extract_strided_slice %118 {offsets = [0, 0], sizes = [8, 240], strides = [1, 1]} : vector<8x256xf32> to vector<8x240xf32>
    %127 = tpu.concatenate %125, %126 in 1 : vector<8x16xf32>, vector<8x240xf32> -> vector<8x256xf32>
    %128 = vector.extract_strided_slice %1 {offsets = [1, 0], sizes = [1, 256], strides = [1, 1]} : vector<9x256xf32> to vector<1x256xf32>
    %129 = vector.broadcast %128 : vector<1x256xf32> to vector<8x256xf32>
    %130 = arith.mulf %127, %129 : vector<8x256xf32>
    %131 = vector.extract_strided_slice %118 {offsets = [0, 241], sizes = [8, 15], strides = [1, 1]} : vector<8x256xf32> to vector<8x15xf32>
    %132 = vector.extract_strided_slice %118 {offsets = [0, 0], sizes = [8, 241], strides = [1, 1]} : vector<8x256xf32> to vector<8x241xf32>
    %133 = tpu.concatenate %131, %132 in 1 : vector<8x15xf32>, vector<8x241xf32> -> vector<8x256xf32>
    %134 = vector.extract_strided_slice %1 {offsets = [2, 0], sizes = [1, 256], strides = [1, 1]} : vector<9x256xf32> to vector<1x256xf32>
    %135 = vector.broadcast %134 : vector<1x256xf32> to vector<8x256xf32>
    %136 = arith.mulf %133, %135 : vector<8x256xf32>
    %137 = tpu.concatenate %124, %130, %136 in 0 : vector<8x256xf32>, vector<8x256xf32>, vector<8x256xf32> -> vector<24x256xf32>
    %c0_41 = arith.constant 0 : index
    %c0_42 = arith.constant 0 : index
    %c0_43 = arith.constant 0 : index
    %138 = vector.load %arg3[%c0_41, %c0_42, %c0_43] : memref<3x8x24xf32, #tpu.memory_space<vmem>>, vector<1x8x24xf32>
    %139 = vector.shape_cast %138 : vector<1x8x24xf32> to vector<8x24xf32>
    %cst_44 = arith.constant dense<0.000000e+00> : vector<8x256xf32>
    %140 = tpu.matmul %139, %137, %cst_44 {dimension_numbers = #tpu.dot_dimension_numbers<[1], [0], [0], [1], [0, 0, 1, 1], [], []>} : vector<8x24xf32>, vector<24x256xf32>, vector<8x256xf32> -> vector<8x256xf32>
    %141 = vector.extract_strided_slice %118 {offsets = [0, 255], sizes = [8, 1], strides = [1, 1]} : vector<8x256xf32> to vector<8x1xf32>
    %142 = vector.extract_strided_slice %118 {offsets = [0, 0], sizes = [8, 255], strides = [1, 1]} : vector<8x256xf32> to vector<8x255xf32>
    %143 = tpu.concatenate %141, %142 in 1 : vector<8x1xf32>, vector<8x255xf32> -> vector<8x256xf32>
    %144 = vector.extract_strided_slice %1 {offsets = [3, 0], sizes = [1, 256], strides = [1, 1]} : vector<9x256xf32> to vector<1x256xf32>
    %145 = vector.broadcast %144 : vector<1x256xf32> to vector<8x256xf32>
    %146 = arith.mulf %143, %145 : vector<8x256xf32>
    %147 = vector.extract_strided_slice %118 {offsets = [0, 1], sizes = [8, 255], strides = [1, 1]} : vector<8x256xf32> to vector<8x255xf32>
    %148 = vector.extract_strided_slice %118 {offsets = [0, 0], sizes = [8, 1], strides = [1, 1]} : vector<8x256xf32> to vector<8x1xf32>
    %149 = tpu.concatenate %147, %148 in 1 : vector<8x255xf32>, vector<8x1xf32> -> vector<8x256xf32>
    %150 = vector.extract_strided_slice %1 {offsets = [5, 0], sizes = [1, 256], strides = [1, 1]} : vector<9x256xf32> to vector<1x256xf32>
    %151 = vector.broadcast %150 : vector<1x256xf32> to vector<8x256xf32>
    %152 = arith.mulf %149, %151 : vector<8x256xf32>
    %153 = tpu.concatenate %146, %118, %152 in 0 : vector<8x256xf32>, vector<8x256xf32>, vector<8x256xf32> -> vector<24x256xf32>
    %c1 = arith.constant 1 : index
    %c0_45 = arith.constant 0 : index
    %c0_46 = arith.constant 0 : index
    %154 = vector.load %arg3[%c1, %c0_45, %c0_46] : memref<3x8x24xf32, #tpu.memory_space<vmem>>, vector<1x8x24xf32>
    %155 = vector.shape_cast %154 : vector<1x8x24xf32> to vector<8x24xf32>
    %cst_47 = arith.constant dense<0.000000e+00> : vector<8x256xf32>
    %156 = tpu.matmul %155, %153, %cst_47 {dimension_numbers = #tpu.dot_dimension_numbers<[1], [0], [0], [1], [0, 0, 1, 1], [], []>} : vector<8x24xf32>, vector<24x256xf32>, vector<8x256xf32> -> vector<8x256xf32>
    %157 = arith.addf %140, %156 : vector<8x256xf32>
    %158 = vector.extract_strided_slice %118 {offsets = [0, 15], sizes = [8, 241], strides = [1, 1]} : vector<8x256xf32> to vector<8x241xf32>
    %159 = vector.extract_strided_slice %118 {offsets = [0, 0], sizes = [8, 15], strides = [1, 1]} : vector<8x256xf32> to vector<8x15xf32>
    %160 = tpu.concatenate %158, %159 in 1 : vector<8x241xf32>, vector<8x15xf32> -> vector<8x256xf32>
    %161 = vector.extract_strided_slice %1 {offsets = [6, 0], sizes = [1, 256], strides = [1, 1]} : vector<9x256xf32> to vector<1x256xf32>
    %162 = vector.broadcast %161 : vector<1x256xf32> to vector<8x256xf32>
    %163 = arith.mulf %160, %162 : vector<8x256xf32>
    %164 = vector.extract_strided_slice %118 {offsets = [0, 16], sizes = [8, 240], strides = [1, 1]} : vector<8x256xf32> to vector<8x240xf32>
    %165 = vector.extract_strided_slice %118 {offsets = [0, 0], sizes = [8, 16], strides = [1, 1]} : vector<8x256xf32> to vector<8x16xf32>
    %166 = tpu.concatenate %164, %165 in 1 : vector<8x240xf32>, vector<8x16xf32> -> vector<8x256xf32>
    %167 = vector.extract_strided_slice %1 {offsets = [7, 0], sizes = [1, 256], strides = [1, 1]} : vector<9x256xf32> to vector<1x256xf32>
    %168 = vector.broadcast %167 : vector<1x256xf32> to vector<8x256xf32>
    %169 = arith.mulf %166, %168 : vector<8x256xf32>
    %170 = vector.extract_strided_slice %118 {offsets = [0, 17], sizes = [8, 239], strides = [1, 1]} : vector<8x256xf32> to vector<8x239xf32>
    %171 = vector.extract_strided_slice %118 {offsets = [0, 0], sizes = [8, 17], strides = [1, 1]} : vector<8x256xf32> to vector<8x17xf32>
    %172 = tpu.concatenate %170, %171 in 1 : vector<8x239xf32>, vector<8x17xf32> -> vector<8x256xf32>
    %173 = vector.extract_strided_slice %1 {offsets = [8, 0], sizes = [1, 256], strides = [1, 1]} : vector<9x256xf32> to vector<1x256xf32>
    %174 = vector.broadcast %173 : vector<1x256xf32> to vector<8x256xf32>
    %175 = arith.mulf %172, %174 : vector<8x256xf32>
    %176 = tpu.concatenate %163, %169, %175 in 0 : vector<8x256xf32>, vector<8x256xf32>, vector<8x256xf32> -> vector<24x256xf32>
    %c2 = arith.constant 2 : index
    %c0_48 = arith.constant 0 : index
    %c0_49 = arith.constant 0 : index
    %177 = vector.load %arg3[%c2, %c0_48, %c0_49] : memref<3x8x24xf32, #tpu.memory_space<vmem>>, vector<1x8x24xf32>
    %178 = vector.shape_cast %177 : vector<1x8x24xf32> to vector<8x24xf32>
    %cst_50 = arith.constant dense<0.000000e+00> : vector<8x256xf32>
    %179 = tpu.matmul %178, %176, %cst_50 {dimension_numbers = #tpu.dot_dimension_numbers<[1], [0], [0], [1], [0, 0, 1, 1], [], []>} : vector<8x24xf32>, vector<24x256xf32>, vector<8x256xf32> -> vector<8x256xf32>
    %180 = arith.addf %157, %179 : vector<8x256xf32>
    %c0_51 = arith.constant 0 : index
    %c0_52 = arith.constant 0 : index
    %181 = vector.load %arg8[%c0_51, %c0_52] : memref<8x1xf32, #tpu.memory_space<vmem>>, vector<8x1xf32>
    %c0_53 = arith.constant 0 : index
    %c0_54 = arith.constant 0 : index
    %182 = vector.load %arg9[%c0_53, %c0_54] : memref<8x1xf32, #tpu.memory_space<vmem>>, vector<8x1xf32>
    %c0_55 = arith.constant 0 : index
    %c0_56 = arith.constant 0 : index
    %183 = vector.load %arg10[%c0_55, %c0_56] : memref<8x1xf32, #tpu.memory_space<vmem>>, vector<8x1xf32>
    %184 = arith.mulf %180, %180 : vector<8x256xf32>
    %cst_57 = arith.constant dense<0.000000e+00> : vector<8xf32>
    %185 = vector.multi_reduction <add>, %180, %cst_57 [1] : vector<8x256xf32> to vector<8xf32>
    %186 = vector.shape_cast %185 : vector<8xf32> to vector<8x1xf32>
    %cst_58 = arith.constant dense<0.000000e+00> : vector<8xf32>
    %187 = vector.multi_reduction <add>, %184, %cst_58 [1] : vector<8x256xf32> to vector<8xf32>
    %188 = vector.shape_cast %187 : vector<8xf32> to vector<8x1xf32>
    %cst_59 = arith.constant 2.560000e+02 : f32
    %189 = vector.broadcast %cst_59 : f32 to vector<8x1xf32>
    %190 = arith.mulf %181, %189 : vector<8x1xf32>
    %191 = arith.addf %186, %190 : vector<8x1xf32>
    %cst_60 = arith.constant 2.000000e+00 : f32
    %192 = vector.broadcast %cst_60 : f32 to vector<8x1xf32>
    %193 = arith.mulf %192, %181 : vector<8x1xf32>
    %194 = arith.mulf %193, %186 : vector<8x1xf32>
    %195 = arith.addf %188, %194 : vector<8x1xf32>
    %196 = arith.mulf %181, %181 : vector<8x1xf32>
    %cst_61 = arith.constant 2.560000e+02 : f32
    %197 = vector.broadcast %cst_61 : f32 to vector<8x1xf32>
    %198 = arith.mulf %196, %197 : vector<8x1xf32>
    %199 = arith.addf %195, %198 : vector<8x1xf32>
    %200 = vector.extract_strided_slice %191 {offsets = [0, 0], sizes = [2, 1], strides = [1, 1]} : vector<8x1xf32> to vector<2x1xf32>
    %cst_62 = arith.constant dense<0.000000e+00> : vector<1xf32>
    %201 = vector.multi_reduction <add>, %200, %cst_62 [0] : vector<2x1xf32> to vector<1xf32>
    %202 = vector.shape_cast %201 : vector<1xf32> to vector<1x1xf32>
    %cst_63 = arith.constant 0.001953125 : f32
    %203 = vector.broadcast %cst_63 : f32 to vector<1x1xf32>
    %204 = arith.mulf %202, %203 : vector<1x1xf32>
    %205 = vector.extract_strided_slice %199 {offsets = [0, 0], sizes = [2, 1], strides = [1, 1]} : vector<8x1xf32> to vector<2x1xf32>
    %cst_64 = arith.constant dense<0.000000e+00> : vector<1xf32>
    %206 = vector.multi_reduction <add>, %205, %cst_64 [0] : vector<2x1xf32> to vector<1xf32>
    %207 = vector.shape_cast %206 : vector<1xf32> to vector<1x1xf32>
    %cst_65 = arith.constant 0.001953125 : f32
    %208 = vector.broadcast %cst_65 : f32 to vector<1x1xf32>
    %209 = arith.mulf %207, %208 : vector<1x1xf32>
    %210 = arith.mulf %204, %204 : vector<1x1xf32>
    %211 = arith.subf %209, %210 : vector<1x1xf32>
    %cst_66 = arith.constant 0.000000e+00 : f32
    %212 = vector.broadcast %cst_66 : f32 to vector<1x1xf32>
    %213 = arith.maximumf %211, %212 : vector<1x1xf32>
    %cst_67 = arith.constant 9.99999974E-6 : f32
    %214 = vector.broadcast %cst_67 : f32 to vector<1x1xf32>
    %215 = arith.addf %213, %214 : vector<1x1xf32>
    %216 = math.rsqrt %215 : vector<1x1xf32>
    %217 = vector.shape_cast %204 : vector<1x1xf32> to vector<1x1xf32>
    %218 = vector.broadcast %217 : vector<1x1xf32> to vector<2x1xf32>
    %219 = vector.shape_cast %216 : vector<1x1xf32> to vector<1x1xf32>
    %220 = vector.broadcast %219 : vector<1x1xf32> to vector<2x1xf32>
    %221 = vector.extract_strided_slice %191 {offsets = [2, 0], sizes = [2, 1], strides = [1, 1]} : vector<8x1xf32> to vector<2x1xf32>
    %cst_68 = arith.constant dense<0.000000e+00> : vector<1xf32>
    %222 = vector.multi_reduction <add>, %221, %cst_68 [0] : vector<2x1xf32> to vector<1xf32>
    %223 = vector.shape_cast %222 : vector<1xf32> to vector<1x1xf32>
    %cst_69 = arith.constant 0.001953125 : f32
    %224 = vector.broadcast %cst_69 : f32 to vector<1x1xf32>
    %225 = arith.mulf %223, %224 : vector<1x1xf32>
    %226 = vector.extract_strided_slice %199 {offsets = [2, 0], sizes = [2, 1], strides = [1, 1]} : vector<8x1xf32> to vector<2x1xf32>
    %cst_70 = arith.constant dense<0.000000e+00> : vector<1xf32>
    %227 = vector.multi_reduction <add>, %226, %cst_70 [0] : vector<2x1xf32> to vector<1xf32>
    %228 = vector.shape_cast %227 : vector<1xf32> to vector<1x1xf32>
    %cst_71 = arith.constant 0.001953125 : f32
    %229 = vector.broadcast %cst_71 : f32 to vector<1x1xf32>
    %230 = arith.mulf %228, %229 : vector<1x1xf32>
    %231 = arith.mulf %225, %225 : vector<1x1xf32>
    %232 = arith.subf %230, %231 : vector<1x1xf32>
    %cst_72 = arith.constant 0.000000e+00 : f32
    %233 = vector.broadcast %cst_72 : f32 to vector<1x1xf32>
    %234 = arith.maximumf %232, %233 : vector<1x1xf32>
    %cst_73 = arith.constant 9.99999974E-6 : f32
    %235 = vector.broadcast %cst_73 : f32 to vector<1x1xf32>
    %236 = arith.addf %234, %235 : vector<1x1xf32>
    %237 = math.rsqrt %236 : vector<1x1xf32>
    %238 = vector.shape_cast %225 : vector<1x1xf32> to vector<1x1xf32>
    %239 = vector.broadcast %238 : vector<1x1xf32> to vector<2x1xf32>
    %240 = vector.shape_cast %237 : vector<1x1xf32> to vector<1x1xf32>
    %241 = vector.broadcast %240 : vector<1x1xf32> to vector<2x1xf32>
    %242 = vector.extract_strided_slice %191 {offsets = [4, 0], sizes = [2, 1], strides = [1, 1]} : vector<8x1xf32> to vector<2x1xf32>
    %cst_74 = arith.constant dense<0.000000e+00> : vector<1xf32>
    %243 = vector.multi_reduction <add>, %242, %cst_74 [0] : vector<2x1xf32> to vector<1xf32>
    %244 = vector.shape_cast %243 : vector<1xf32> to vector<1x1xf32>
    %cst_75 = arith.constant 0.001953125 : f32
    %245 = vector.broadcast %cst_75 : f32 to vector<1x1xf32>
    %246 = arith.mulf %244, %245 : vector<1x1xf32>
    %247 = vector.extract_strided_slice %199 {offsets = [4, 0], sizes = [2, 1], strides = [1, 1]} : vector<8x1xf32> to vector<2x1xf32>
    %cst_76 = arith.constant dense<0.000000e+00> : vector<1xf32>
    %248 = vector.multi_reduction <add>, %247, %cst_76 [0] : vector<2x1xf32> to vector<1xf32>
    %249 = vector.shape_cast %248 : vector<1xf32> to vector<1x1xf32>
    %cst_77 = arith.constant 0.001953125 : f32
    %250 = vector.broadcast %cst_77 : f32 to vector<1x1xf32>
    %251 = arith.mulf %249, %250 : vector<1x1xf32>
    %252 = arith.mulf %246, %246 : vector<1x1xf32>
    %253 = arith.subf %251, %252 : vector<1x1xf32>
    %cst_78 = arith.constant 0.000000e+00 : f32
    %254 = vector.broadcast %cst_78 : f32 to vector<1x1xf32>
    %255 = arith.maximumf %253, %254 : vector<1x1xf32>
    %cst_79 = arith.constant 9.99999974E-6 : f32
    %256 = vector.broadcast %cst_79 : f32 to vector<1x1xf32>
    %257 = arith.addf %255, %256 : vector<1x1xf32>
    %258 = math.rsqrt %257 : vector<1x1xf32>
    %259 = vector.shape_cast %246 : vector<1x1xf32> to vector<1x1xf32>
    %260 = vector.broadcast %259 : vector<1x1xf32> to vector<2x1xf32>
    %261 = vector.shape_cast %258 : vector<1x1xf32> to vector<1x1xf32>
    %262 = vector.broadcast %261 : vector<1x1xf32> to vector<2x1xf32>
    %263 = vector.extract_strided_slice %191 {offsets = [6, 0], sizes = [2, 1], strides = [1, 1]} : vector<8x1xf32> to vector<2x1xf32>
    %cst_80 = arith.constant dense<0.000000e+00> : vector<1xf32>
    %264 = vector.multi_reduction <add>, %263, %cst_80 [0] : vector<2x1xf32> to vector<1xf32>
    %265 = vector.shape_cast %264 : vector<1xf32> to vector<1x1xf32>
    %cst_81 = arith.constant 0.001953125 : f32
    %266 = vector.broadcast %cst_81 : f32 to vector<1x1xf32>
    %267 = arith.mulf %265, %266 : vector<1x1xf32>
    %268 = vector.extract_strided_slice %199 {offsets = [6, 0], sizes = [2, 1], strides = [1, 1]} : vector<8x1xf32> to vector<2x1xf32>
    %cst_82 = arith.constant dense<0.000000e+00> : vector<1xf32>
    %269 = vector.multi_reduction <add>, %268, %cst_82 [0] : vector<2x1xf32> to vector<1xf32>
    %270 = vector.shape_cast %269 : vector<1xf32> to vector<1x1xf32>
    %cst_83 = arith.constant 0.001953125 : f32
    %271 = vector.broadcast %cst_83 : f32 to vector<1x1xf32>
    %272 = arith.mulf %270, %271 : vector<1x1xf32>
    %273 = arith.mulf %267, %267 : vector<1x1xf32>
    %274 = arith.subf %272, %273 : vector<1x1xf32>
    %cst_84 = arith.constant 0.000000e+00 : f32
    %275 = vector.broadcast %cst_84 : f32 to vector<1x1xf32>
    %276 = arith.maximumf %274, %275 : vector<1x1xf32>
    %cst_85 = arith.constant 9.99999974E-6 : f32
    %277 = vector.broadcast %cst_85 : f32 to vector<1x1xf32>
    %278 = arith.addf %276, %277 : vector<1x1xf32>
    %279 = math.rsqrt %278 : vector<1x1xf32>
    %280 = vector.shape_cast %267 : vector<1x1xf32> to vector<1x1xf32>
    %281 = vector.broadcast %280 : vector<1x1xf32> to vector<2x1xf32>
    %282 = vector.shape_cast %279 : vector<1x1xf32> to vector<1x1xf32>
    %283 = vector.broadcast %282 : vector<1x1xf32> to vector<2x1xf32>
    %284 = tpu.concatenate %218, %239, %260, %281 in 0 : vector<2x1xf32>, vector<2x1xf32>, vector<2x1xf32>, vector<2x1xf32> -> vector<8x1xf32>
    %285 = tpu.concatenate %220, %241, %262, %283 in 0 : vector<2x1xf32>, vector<2x1xf32>, vector<2x1xf32>, vector<2x1xf32> -> vector<8x1xf32>
    %286 = arith.mulf %285, %182 : vector<8x1xf32>
    %287 = arith.subf %181, %284 : vector<8x1xf32>
    %288 = arith.mulf %287, %286 : vector<8x1xf32>
    %289 = arith.addf %183, %288 : vector<8x1xf32>
    %290 = vector.broadcast %286 : vector<8x1xf32> to vector<8x256xf32>
    %291 = arith.mulf %180, %290 : vector<8x256xf32>
    %292 = vector.broadcast %289 : vector<8x1xf32> to vector<8x256xf32>
    %293 = arith.addf %291, %292 : vector<8x256xf32>
    %cst_86 = arith.constant 0.000000e+00 : f32
    %294 = vector.broadcast %cst_86 : f32 to vector<8x256xf32>
    %295 = arith.maximumf %293, %294 : vector<8x256xf32>
    %c0_87 = arith.constant 0 : index
    %c0_88 = arith.constant 0 : index
    %296 = vector.load %arg4[%c0_87, %c0_88] : memref<32x8xf32, #tpu.memory_space<vmem>>, vector<32x8xf32>
    %cst_89 = arith.constant dense<0.000000e+00> : vector<32x256xf32>
    %297 = tpu.matmul %296, %295, %cst_89 {dimension_numbers = #tpu.dot_dimension_numbers<[1], [0], [0], [1], [0, 0, 1, 1], [], []>} : vector<32x8xf32>, vector<8x256xf32>, vector<32x256xf32> -> vector<32x256xf32>
    %c0_90 = arith.constant 0 : index
    %c0_91 = arith.constant 0 : index
    %298 = vector.load %arg11[%c0_90, %c0_91] : memref<32x1xf32, #tpu.memory_space<vmem>>, vector<32x1xf32>
    %c0_92 = arith.constant 0 : index
    %c0_93 = arith.constant 0 : index
    %299 = vector.load %arg12[%c0_92, %c0_93] : memref<32x1xf32, #tpu.memory_space<vmem>>, vector<32x1xf32>
    %c0_94 = arith.constant 0 : index
    %c0_95 = arith.constant 0 : index
    %300 = vector.load %arg13[%c0_94, %c0_95] : memref<32x1xf32, #tpu.memory_space<vmem>>, vector<32x1xf32>
    %301 = arith.mulf %297, %297 : vector<32x256xf32>
    %cst_96 = arith.constant dense<0.000000e+00> : vector<32xf32>
    %302 = vector.multi_reduction <add>, %297, %cst_96 [1] : vector<32x256xf32> to vector<32xf32>
    %303 = vector.shape_cast %302 : vector<32xf32> to vector<32x1xf32>
    %cst_97 = arith.constant dense<0.000000e+00> : vector<32xf32>
    %304 = vector.multi_reduction <add>, %301, %cst_97 [1] : vector<32x256xf32> to vector<32xf32>
    %305 = vector.shape_cast %304 : vector<32xf32> to vector<32x1xf32>
    %cst_98 = arith.constant 2.560000e+02 : f32
    %306 = vector.broadcast %cst_98 : f32 to vector<32x1xf32>
    %307 = arith.mulf %298, %306 : vector<32x1xf32>
    %308 = arith.addf %303, %307 : vector<32x1xf32>
    %cst_99 = arith.constant 2.000000e+00 : f32
    %309 = vector.broadcast %cst_99 : f32 to vector<32x1xf32>
    %310 = arith.mulf %309, %298 : vector<32x1xf32>
    %311 = arith.mulf %310, %303 : vector<32x1xf32>
    %312 = arith.addf %305, %311 : vector<32x1xf32>
    %313 = arith.mulf %298, %298 : vector<32x1xf32>
    %cst_100 = arith.constant 2.560000e+02 : f32
    %314 = vector.broadcast %cst_100 : f32 to vector<32x1xf32>
    %315 = arith.mulf %313, %314 : vector<32x1xf32>
    %316 = arith.addf %312, %315 : vector<32x1xf32>
    %317 = vector.extract_strided_slice %308 {offsets = [0, 0], sizes = [8, 1], strides = [1, 1]} : vector<32x1xf32> to vector<8x1xf32>
    %cst_101 = arith.constant dense<0.000000e+00> : vector<1xf32>
    %318 = vector.multi_reduction <add>, %317, %cst_101 [0] : vector<8x1xf32> to vector<1xf32>
    %319 = vector.shape_cast %318 : vector<1xf32> to vector<1x1xf32>
    %cst_102 = arith.constant 4.8828125E-4 : f32
    %320 = vector.broadcast %cst_102 : f32 to vector<1x1xf32>
    %321 = arith.mulf %319, %320 : vector<1x1xf32>
    %322 = vector.extract_strided_slice %316 {offsets = [0, 0], sizes = [8, 1], strides = [1, 1]} : vector<32x1xf32> to vector<8x1xf32>
    %cst_103 = arith.constant dense<0.000000e+00> : vector<1xf32>
    %323 = vector.multi_reduction <add>, %322, %cst_103 [0] : vector<8x1xf32> to vector<1xf32>
    %324 = vector.shape_cast %323 : vector<1xf32> to vector<1x1xf32>
    %cst_104 = arith.constant 4.8828125E-4 : f32
    %325 = vector.broadcast %cst_104 : f32 to vector<1x1xf32>
    %326 = arith.mulf %324, %325 : vector<1x1xf32>
    %327 = arith.mulf %321, %321 : vector<1x1xf32>
    %328 = arith.subf %326, %327 : vector<1x1xf32>
    %cst_105 = arith.constant 0.000000e+00 : f32
    %329 = vector.broadcast %cst_105 : f32 to vector<1x1xf32>
    %330 = arith.maximumf %328, %329 : vector<1x1xf32>
    %cst_106 = arith.constant 9.99999974E-6 : f32
    %331 = vector.broadcast %cst_106 : f32 to vector<1x1xf32>
    %332 = arith.addf %330, %331 : vector<1x1xf32>
    %333 = math.rsqrt %332 : vector<1x1xf32>
    %334 = vector.shape_cast %321 : vector<1x1xf32> to vector<1x1xf32>
    %335 = vector.broadcast %334 : vector<1x1xf32> to vector<8x1xf32>
    %336 = vector.shape_cast %333 : vector<1x1xf32> to vector<1x1xf32>
    %337 = vector.broadcast %336 : vector<1x1xf32> to vector<8x1xf32>
    %338 = vector.extract_strided_slice %308 {offsets = [8, 0], sizes = [8, 1], strides = [1, 1]} : vector<32x1xf32> to vector<8x1xf32>
    %cst_107 = arith.constant dense<0.000000e+00> : vector<1xf32>
    %339 = vector.multi_reduction <add>, %338, %cst_107 [0] : vector<8x1xf32> to vector<1xf32>
    %340 = vector.shape_cast %339 : vector<1xf32> to vector<1x1xf32>
    %cst_108 = arith.constant 4.8828125E-4 : f32
    %341 = vector.broadcast %cst_108 : f32 to vector<1x1xf32>
    %342 = arith.mulf %340, %341 : vector<1x1xf32>
    %343 = vector.extract_strided_slice %316 {offsets = [8, 0], sizes = [8, 1], strides = [1, 1]} : vector<32x1xf32> to vector<8x1xf32>
    %cst_109 = arith.constant dense<0.000000e+00> : vector<1xf32>
    %344 = vector.multi_reduction <add>, %343, %cst_109 [0] : vector<8x1xf32> to vector<1xf32>
    %345 = vector.shape_cast %344 : vector<1xf32> to vector<1x1xf32>
    %cst_110 = arith.constant 4.8828125E-4 : f32
    %346 = vector.broadcast %cst_110 : f32 to vector<1x1xf32>
    %347 = arith.mulf %345, %346 : vector<1x1xf32>
    %348 = arith.mulf %342, %342 : vector<1x1xf32>
    %349 = arith.subf %347, %348 : vector<1x1xf32>
    %cst_111 = arith.constant 0.000000e+00 : f32
    %350 = vector.broadcast %cst_111 : f32 to vector<1x1xf32>
    %351 = arith.maximumf %349, %350 : vector<1x1xf32>
    %cst_112 = arith.constant 9.99999974E-6 : f32
    %352 = vector.broadcast %cst_112 : f32 to vector<1x1xf32>
    %353 = arith.addf %351, %352 : vector<1x1xf32>
    %354 = math.rsqrt %353 : vector<1x1xf32>
    %355 = vector.shape_cast %342 : vector<1x1xf32> to vector<1x1xf32>
    %356 = vector.broadcast %355 : vector<1x1xf32> to vector<8x1xf32>
    %357 = vector.shape_cast %354 : vector<1x1xf32> to vector<1x1xf32>
    %358 = vector.broadcast %357 : vector<1x1xf32> to vector<8x1xf32>
    %359 = vector.extract_strided_slice %308 {offsets = [16, 0], sizes = [8, 1], strides = [1, 1]} : vector<32x1xf32> to vector<8x1xf32>
    %cst_113 = arith.constant dense<0.000000e+00> : vector<1xf32>
    %360 = vector.multi_reduction <add>, %359, %cst_113 [0] : vector<8x1xf32> to vector<1xf32>
    %361 = vector.shape_cast %360 : vector<1xf32> to vector<1x1xf32>
    %cst_114 = arith.constant 4.8828125E-4 : f32
    %362 = vector.broadcast %cst_114 : f32 to vector<1x1xf32>
    %363 = arith.mulf %361, %362 : vector<1x1xf32>
    %364 = vector.extract_strided_slice %316 {offsets = [16, 0], sizes = [8, 1], strides = [1, 1]} : vector<32x1xf32> to vector<8x1xf32>
    %cst_115 = arith.constant dense<0.000000e+00> : vector<1xf32>
    %365 = vector.multi_reduction <add>, %364, %cst_115 [0] : vector<8x1xf32> to vector<1xf32>
    %366 = vector.shape_cast %365 : vector<1xf32> to vector<1x1xf32>
    %cst_116 = arith.constant 4.8828125E-4 : f32
    %367 = vector.broadcast %cst_116 : f32 to vector<1x1xf32>
    %368 = arith.mulf %366, %367 : vector<1x1xf32>
    %369 = arith.mulf %363, %363 : vector<1x1xf32>
    %370 = arith.subf %368, %369 : vector<1x1xf32>
    %cst_117 = arith.constant 0.000000e+00 : f32
    %371 = vector.broadcast %cst_117 : f32 to vector<1x1xf32>
    %372 = arith.maximumf %370, %371 : vector<1x1xf32>
    %cst_118 = arith.constant 9.99999974E-6 : f32
    %373 = vector.broadcast %cst_118 : f32 to vector<1x1xf32>
    %374 = arith.addf %372, %373 : vector<1x1xf32>
    %375 = math.rsqrt %374 : vector<1x1xf32>
    %376 = vector.shape_cast %363 : vector<1x1xf32> to vector<1x1xf32>
    %377 = vector.broadcast %376 : vector<1x1xf32> to vector<8x1xf32>
    %378 = vector.shape_cast %375 : vector<1x1xf32> to vector<1x1xf32>
    %379 = vector.broadcast %378 : vector<1x1xf32> to vector<8x1xf32>
    %380 = vector.extract_strided_slice %308 {offsets = [24, 0], sizes = [8, 1], strides = [1, 1]} : vector<32x1xf32> to vector<8x1xf32>
    %cst_119 = arith.constant dense<0.000000e+00> : vector<1xf32>
    %381 = vector.multi_reduction <add>, %380, %cst_119 [0] : vector<8x1xf32> to vector<1xf32>
    %382 = vector.shape_cast %381 : vector<1xf32> to vector<1x1xf32>
    %cst_120 = arith.constant 4.8828125E-4 : f32
    %383 = vector.broadcast %cst_120 : f32 to vector<1x1xf32>
    %384 = arith.mulf %382, %383 : vector<1x1xf32>
    %385 = vector.extract_strided_slice %316 {offsets = [24, 0], sizes = [8, 1], strides = [1, 1]} : vector<32x1xf32> to vector<8x1xf32>
    %cst_121 = arith.constant dense<0.000000e+00> : vector<1xf32>
    %386 = vector.multi_reduction <add>, %385, %cst_121 [0] : vector<8x1xf32> to vector<1xf32>
    %387 = vector.shape_cast %386 : vector<1xf32> to vector<1x1xf32>
    %cst_122 = arith.constant 4.8828125E-4 : f32
    %388 = vector.broadcast %cst_122 : f32 to vector<1x1xf32>
    %389 = arith.mulf %387, %388 : vector<1x1xf32>
    %390 = arith.mulf %384, %384 : vector<1x1xf32>
    %391 = arith.subf %389, %390 : vector<1x1xf32>
    %cst_123 = arith.constant 0.000000e+00 : f32
    %392 = vector.broadcast %cst_123 : f32 to vector<1x1xf32>
    %393 = arith.maximumf %391, %392 : vector<1x1xf32>
    %cst_124 = arith.constant 9.99999974E-6 : f32
    %394 = vector.broadcast %cst_124 : f32 to vector<1x1xf32>
    %395 = arith.addf %393, %394 : vector<1x1xf32>
    %396 = math.rsqrt %395 : vector<1x1xf32>
    %397 = vector.shape_cast %384 : vector<1x1xf32> to vector<1x1xf32>
    %398 = vector.broadcast %397 : vector<1x1xf32> to vector<8x1xf32>
    %399 = vector.shape_cast %396 : vector<1x1xf32> to vector<1x1xf32>
    %400 = vector.broadcast %399 : vector<1x1xf32> to vector<8x1xf32>
    %401 = tpu.concatenate %335, %356, %377, %398 in 0 : vector<8x1xf32>, vector<8x1xf32>, vector<8x1xf32>, vector<8x1xf32> -> vector<32x1xf32>
    %402 = tpu.concatenate %337, %358, %379, %400 in 0 : vector<8x1xf32>, vector<8x1xf32>, vector<8x1xf32>, vector<8x1xf32> -> vector<32x1xf32>
    %403 = arith.mulf %402, %299 : vector<32x1xf32>
    %404 = arith.subf %298, %401 : vector<32x1xf32>
    %405 = arith.mulf %404, %403 : vector<32x1xf32>
    %406 = arith.addf %300, %405 : vector<32x1xf32>
    %407 = vector.broadcast %403 : vector<32x1xf32> to vector<32x256xf32>
    %408 = arith.mulf %297, %407 : vector<32x256xf32>
    %409 = vector.broadcast %406 : vector<32x1xf32> to vector<32x256xf32>
    %410 = arith.addf %408, %409 : vector<32x256xf32>
    %cst_125 = arith.constant 0.000000e+00 : f32
    %411 = vector.broadcast %cst_125 : f32 to vector<32x256xf32>
    %412 = arith.maximumf %410, %411 : vector<32x256xf32>
    %413 = arith.addf %0, %412 : vector<32x256xf32>
    %cst_126 = arith.constant 0.000000e+00 : f32
    %414 = vector.broadcast %cst_126 : f32 to vector<32x256xf32>
    %415 = arith.maximumf %413, %414 : vector<32x256xf32>
    %c0_127 = arith.constant 0 : index
    %c0_128 = arith.constant 0 : index
    %416 = vector.load %arg15[%c0_127, %c0_128] : memref<32x256xf32, #tpu.memory_space<vmem>>, vector<32x256xf32>
    tpu.vector_store %arg15[%c0_127, %c0_128], %415 {strides = array<i32>} : memref<32x256xf32, #tpu.memory_space<vmem>>, vector<32x256xf32>,
    return
  }
  func.func @transform_0(%arg0: i32) -> (i32, i32) {
    %c0_i32 = arith.constant 0 : i32
    %c0_i32_0 = arith.constant 0 : i32
    return %c0_i32, %arg0 : i32, i32
  }
  func.func @transform_1(%arg0: i32) -> (i32, i32) {
    %c0_i32 = arith.constant 0 : i32
    %c0_i32_0 = arith.constant 0 : i32
    %c0_i32_1 = arith.constant 0 : i32
    return %c0_i32, %c0_i32_0 : i32, i32
  }
  func.func @transform_2(%arg0: i32) -> (i32, i32, i32) {
    %c0_i32 = arith.constant 0 : i32
    %c0_i32_0 = arith.constant 0 : i32
    %c0_i32_1 = arith.constant 0 : i32
    %c0_i32_2 = arith.constant 0 : i32
    return %c0_i32, %c0_i32_0, %c0_i32_1 : i32, i32, i32
  }
  func.func @transform_3(%arg0: i32) -> (i32, i32) {
    %c0_i32 = arith.constant 0 : i32
    %c0_i32_0 = arith.constant 0 : i32
    %c0_i32_1 = arith.constant 0 : i32
    return %c0_i32, %c0_i32_0 : i32, i32
  }
  func.func @transform_4(%arg0: i32) -> (i32, i32) {
    %c0_i32 = arith.constant 0 : i32
    %c0_i32_0 = arith.constant 0 : i32
    %c0_i32_1 = arith.constant 0 : i32
    return %c0_i32, %c0_i32_0 : i32, i32
  }
  func.func @transform_5(%arg0: i32) -> (i32, i32) {
    %c0_i32 = arith.constant 0 : i32
    %c0_i32_0 = arith.constant 0 : i32
    %c0_i32_1 = arith.constant 0 : i32
    return %c0_i32, %c0_i32_0 : i32, i32
  }
  func.func @transform_6(%arg0: i32) -> (i32, i32) {
    %c0_i32 = arith.constant 0 : i32
    %c0_i32_0 = arith.constant 0 : i32
    %c0_i32_1 = arith.constant 0 : i32
    return %c0_i32, %c0_i32_0 : i32, i32
  }
  func.func @transform_7(%arg0: i32) -> (i32, i32) {
    %c0_i32 = arith.constant 0 : i32
    %c0_i32_0 = arith.constant 0 : i32
    %c0_i32_1 = arith.constant 0 : i32
    return %c0_i32, %c0_i32_0 : i32, i32
  }
  func.func @transform_8(%arg0: i32) -> (i32, i32) {
    %c0_i32 = arith.constant 0 : i32
    %c0_i32_0 = arith.constant 0 : i32
    %c0_i32_1 = arith.constant 0 : i32
    return %c0_i32, %c0_i32_0 : i32, i32
  }
  func.func @transform_9(%arg0: i32) -> (i32, i32) {
    %c0_i32 = arith.constant 0 : i32
    %c0_i32_0 = arith.constant 0 : i32
    %c0_i32_1 = arith.constant 0 : i32
    return %c0_i32, %c0_i32_0 : i32, i32
  }
  func.func @transform_10(%arg0: i32) -> (i32, i32) {
    %c0_i32 = arith.constant 0 : i32
    %c0_i32_0 = arith.constant 0 : i32
    %c0_i32_1 = arith.constant 0 : i32
    return %c0_i32, %c0_i32_0 : i32, i32
  }
  func.func @transform_11(%arg0: i32) -> (i32, i32) {
    %c0_i32 = arith.constant 0 : i32
    %c0_i32_0 = arith.constant 0 : i32
    %c0_i32_1 = arith.constant 0 : i32
    return %c0_i32, %c0_i32_0 : i32, i32
  }
  func.func @transform_12(%arg0: i32) -> (i32, i32) {
    %c0_i32 = arith.constant 0 : i32
    %c0_i32_0 = arith.constant 0 : i32
    %c0_i32_1 = arith.constant 0 : i32
    return %c0_i32, %c0_i32_0 : i32, i32
  }
  func.func @transform_13(%arg0: i32) -> (i32, i32) {
    %c0_i32 = arith.constant 0 : i32
    %c0_i32_0 = arith.constant 0 : i32
    %c0_i32_1 = arith.constant 0 : i32
    return %c0_i32, %c0_i32_0 : i32, i32
  }
  func.func @transform_14(%arg0: i32) -> (i32, i32) {
    %c0_i32 = arith.constant 0 : i32
    %c0_i32_0 = arith.constant 0 : i32
    return %c0_i32, %arg0 : i32, i32
  }
}

</mosaic_0001>

<bundles_post_ra>
// kernel: tpu_custom_call.1
= control target key start
LH: loop header
LB: loop body
LE: loop exit
PB: predicated region body
PF: predicated region fallthrough
CT: control target
= control target key end

     0   :  { %s2451_s0 = inlined_call_operand.vmem [shape: f32[32,512], index: 0, kind: input, shape index: {}]   ;;  %s2452_s1 = inlined_call_operand.vmem [shape: f32[8,32], index: 1, kind: input, shape index: {}]   ;;  %s2453_s2 = inlined_call_operand.vmem [shape: f32[3,8,24], index: 2, kind: input, shape index: {}]   ;;  %s2454_s3 = inlined_call_operand.vmem [shape: f32[32,8], index: 3, kind: input, shape index: {}]   ;;  %s2455_s4 = inlined_call_operand.vmem [shape: f32[8,1], index: 4, kind: input, shape index: {}]   ;;  %s2456_s5 = inlined_call_operand.vmem [shape: f32[8,1], index: 5, kind: input, shape index: {}]   ;;  %s2457_s6 = inlined_call_operand.vmem [shape: f32[8,1], index: 6, kind: input, shape index: {}]   ;;  %s2458_s7 = inlined_call_operand.vmem [shape: f32[8,1], index: 7, kind: input, shape index: {}]   ;;  %s2459_s8 = inlined_call_operand.vmem [shape: f32[8,1], index: 8, kind: input, shape index: {}]   ;;  %s2460_s9 = inlined_call_operand.vmem [shape: f32[8,1], index: 9, kind: input, shape index: {}]   ;;  %s2461_s10 = inlined_call_operand.vmem [shape: f32[32,1], index: 10, kind: input, shape index: {}]   ;;  %s2462_s11 = inlined_call_operand.vmem [shape: f32[32,1], index: 11, kind: input, shape index: {}]   ;;  %s2463_s12 = inlined_call_operand.vmem [shape: f32[32,1], index: 12, kind: input, shape index: {}]   ;;  %s2464_s13 = inlined_call_operand.vmem [shape: f32[9,256], index: 13, kind: input, shape index: {}]   ;;  %s2465_s14 = inlined_call_operand.hbm [shape: f32[32,512], index: 14, kind: output, shape index: {}]  }
   0x1   :  { %2469 = sst [smem:[#allocation6_spill]] %s2451_s0 }
   0x2   :  { %2470 = sst [smem:[#allocation7_spill]] %s2452_s1 }
   0x3   :  { %2471 = sst [smem:[#allocation8_spill]] %s2453_s2 }
   0x4   :  { %2472 = sst [smem:[#allocation9_spill]] %s2455_s4 }
   0x5   :  { %19 = vsyncpa [#allocation4], 0 }
   0x6   :  { %21 = vsyncpa [#allocation4 + $0x1], 0  ;;  %s2013_s29 = smov 0   ;;  %s2015_s30 = smov 0  }
   0x7   :  { %s2017_s15 = smov 0   ;;  %s2019_s16 = smov 0  }
   0x8 LB: > { %s2467_s17 = sadd.s32 4294967295, %s1923_s16   ;;  %s1724_s18 = sadd.s32 4294967294, %s1923_s16   ;;  %s1923_s16 = sphi %s2019_s16, %s2485_s16   ;;  %s1919_s15 = sphi %s2017_s15, %s2484_s15   ;;  %s1915_s30 = sphi %s2015_s30, %s2483_s30   ;;  %s1911_s29 = sphi %s2013_s29, %s2482_s29  }
   0x9   : > { %s2036_s19 = sadd.s32 1, %s1923_s16   ;;  %s34_s20 = sadd.s32 1, %s1919_s15 }
   0xa   : > { %s31_s21 = ssub.s32 %s1923_s16, %s2036_s19  ;;  %p41_p0 = scmp.ne.s32.totalorder %s1919_s15, %s1915_s30 }
   0xb   : > { %p32_p1 = scmp.eq.s32.totalorder %s31_s21, 0  ;;  %p42_p2 = scmp.eq.s32.totalorder %s1923_s16, 0 }
   0xc   : > { %p344_p3 = scmp.eq.s32.totalorder %s2467_s17, 1  ;;  %p349_p4 = scmp.ne.s32.totalorder %s1915_s30, %s1911_s29 }
   0xd   : > { %s2049_s22 = scalar_select %p32_p1, %s1919_s15, %s34_s20  }
   0xe   : > { %p43_p5 = por %p42_p2, %p41_p0  ;;  %p2051_p6 = por %p344_p3, %p41_p0 }
   0xf   : > { %p350_p7 = scmp.eq.s32.totalorder %s1724_s18, 1  ;;  %p1726_p9 = scmp.ge.s32.totalorder %s1923_s16, 2 }
  0x11   : > { %p2055_p8 = por %p350_p7, %p349_p4  ;;  %405 = sbr.rel (%p1726_p9) target bundleno = 38 (0x26), region = 68 }
  0x18   : > { %408 = sbr.rel (!%p43_p5) target bundleno = 38 (0x26), region = 72  ;;  %s410_s25 = sand.u32 (%p43_p5), 1, %s1919_s15  }
  0x19   : > { %s1750_s26 = sshll.u32 (%p43_p5), %s1923_s16, 4  ;;  %s1727_s27 = sshll.u32 (%p43_p5), %s410_s25, 6 }
  0x1a   : > { %s2475_s0 = sld [smem:[#allocation6_spill]] (%p43_p5)  ;;  %s412_s18 = scalar_lea.vmem (%p43_p5), [#allocation2], %s1727_s27 }
  0x20   : > { %s415_s21 = scalar_lea.vmem %s2475_s0, %s1750_s26 }
  0x21   : > { %v428_v0 = vld [vmem:[%s415_s21] sm:$0xff]  ;;  %v430_v1 = vld [vmem:[%s415_s21 + $0x8] sm:$0xff] }
  0x22   : > { %v432_v2 = vld [vmem:[%s415_s21 + $0x20] sm:$0xff]  ;;  %429 = vst [vmem:[%s412_s18] sm:$0xff] %v428_v0  ;;  %431 = vst [vmem:[%s412_s18 + $0x8] sm:$0xff] %v430_v1  ;;  %v434_v3 = vld [vmem:[%s415_s21 + $0x28] sm:$0xff] }
  0x23   : > { %433 = vst [vmem:[%s412_s18 + $0x10] sm:$0xff] %v432_v2  ;;  %v436_v4 = vld [vmem:[%s415_s21 + $0x40] sm:$0xff]  ;;  %v438_v5 = vld [vmem:[%s415_s21 + $0x48] sm:$0xff]  ;;  %435 = vst [vmem:[%s412_s18 + $0x18] sm:$0xff] %v434_v3 }
  0x24   : > { %437 = vst [vmem:[%s412_s18 + $0x20] sm:$0xff] %v436_v4  ;;  %439 = vst [vmem:[%s412_s18 + $0x28] sm:$0xff] %v438_v5  ;;  %v440_v6 = vld [vmem:[%s415_s21 + $0x60] sm:$0xff]  ;;  %v442_v7 = vld [vmem:[%s415_s21 + $0x68] sm:$0xff] }
  0x25   : > { %441 = vst [vmem:[%s412_s18 + $0x30] sm:$0xff] %v440_v6  ;;  %443 = vst [vmem:[%s412_s18 + $0x38] sm:$0xff] %v442_v7 }
  0x26 PF: > { %p1730_p10 = scmp.ge.s32.totalorder %s1923_s16, 1  ;;  %p448_p11 = scmp.lt.s32.totalorder %s1923_s16, 3 }
  0x28   : > { %p449_p12 = pnand %p1730_p10, %p448_p11 }
  0x29   : > { %s2466_s25 = sand.u32 (!%p449_p12), 1, %s1915_s30   ;;  %v1925_v8 = vmov (!%p449_p12), 0.0   ;;  %s2476_s1 = sld [smem:[#allocation7_spill]] (!%p449_p12)  ;;  %vm515_vm0 = vcmask (!%p449_p12), 261120   ;;  %v1926_v28 = vmov (!%p449_p12), 0   ;;  %vm609_vm1 = vcmask (!%p449_p12), 1024  }
  0x2a   : > { %452 = sbr.rel (%p449_p12) target bundleno = 1876 (0x754), region = 95  ;;  %s2072_s26 = sshll.u32 (!%p449_p12), %s2466_s25, 6  ;;  %583 = vmatprep.mubr.f32.mxu0 (!%p449_p12), %v1925_v8  ;;  %910 = vmatprep.mubr.f32.mxu1 (!%p449_p12), %v1925_v8  ;;  %vm708_vm2 = vcmask (!%p449_p12), 1041408   ;;  %vm710_vm3 = vcmask (!%p449_p12), 1043456   ;;  %vm712_vm4 = vcmask (!%p449_p12), 1045504   ;;  %vm805_vm5 = vcmask (!%p449_p12), 7168  }
  0x2b   : > { %s2077_s27 = scalar_lea.vmem (!%p449_p12), [#allocation2], %s2072_s26  ;;  %1827 = vset.pattern.permute.xlu1 (!%p449_p12), %v1926_v28  ;;  %1828 = vset.pattern.permute.xlu0 (!%p449_p12), %v1926_v28  ;;  %s2477_s4 = sld [smem:[#allocation9_spill]] (!%p449_p12)  ;;  %vm824_vm6 = vcmask (!%p449_p12), 1039360   ;;  %vm842_vm7 = vcmask (!%p449_p12), 195584   ;;  %vm744_vm8 = vcmask (!%p449_p12), 138240   ;;  %vm764_vm9 = vcmask (!%p449_p12), 130048  }
  0x2c   : > { %v503_v9 = vld [vmem:[%s2077_s27 + $0x8] sm:$0xff] (!%p449_p12)  ;;  %v505_v10 = vld [vmem:[%s2077_s27 + $0x18] sm:$0xff] (!%p449_p12)  ;;  %v502_v11 = vld [vmem:[%s2077_s27] sm:$0xff] (!%p449_p12)  ;;  %s1927_s28 = smov (!%p449_p12), 1   ;;  %s2468_s20 = smov (!%p449_p12), 16   ;;  %vm784_vm10 = vcmask (!%p449_p12), 121856  }
  0x2d   : > { %v1752_v12 = vpack.c.bf16 (!%p449_p12), %v505_v10, %v503_v9  ;;  %v504_v13 = vld [vmem:[%s2077_s27 + $0x10] sm:$0xff] (!%p449_p12)  ;;  %v507_v14 = vld [vmem:[%s2077_s27 + $0x28] sm:$0xff] (!%p449_p12)  ;;  %v509_v15 = vld [vmem:[%s2077_s27 + $0x38] sm:$0xff] (!%p449_p12)  ;;  %s1929_s21 = smov (!%p449_p12), 127   ;;  %s1930_s18 = smov (!%p449_p12), 15   ;;  %vm995_vm11 = vcmask (!%p449_p12), 924672  }
  0x2e   : > { %v1754_v16 = vpack.c.bf16 (!%p449_p12), %v504_v13, %v502_v11  ;;  %v1756_v17 = vpack.c.bf16 (!%p449_p12), %v509_v15, %v507_v14  ;;  %v506_v18 = vld [vmem:[%s2077_s27 + $0x20] sm:$0xff] (!%p449_p12)  ;;  %v508_v19 = vld [vmem:[%s2077_s27 + $0x30] sm:$0xff] (!%p449_p12)  ;;  %s1931_s25 = smov (!%p449_p12), 113   ;;  %s1932_s17 = smov (!%p449_p12), 17   ;;  %vm1015_vm12 = vcmask (!%p449_p12), 916480   ;;  %vm1035_vm13 = vcmask (!%p449_p12), 908288  }
  0x2f   : > { %1753 = vmatprep.subr.bf16.mxu0 (!%p449_p12), %v1752_v12  ;;  %v1758_v20 = vpack.c.bf16 (!%p449_p12), %v508_v19, %v506_v18  ;;  %v514_v21 = vld [vmem:[%s2476_s1] sm:$0xff] (!%p449_p12)  ;;  %s1933_s0 = smov (!%p449_p12), 112   ;;  %s1934_s1 = smov (!%p449_p12), 111   ;;  %vm1276_vm14 = vcmask (!%p449_p12), 64512  }
  0x30   : > { %1755 = vmatpush1.bf16.msra.mxu0 (!%p449_p12), %v1754_v16  ;;  %s2478_s2 = sld [smem:[#allocation8_spill]] (!%p449_p12) }
  0x31   : > { %1757 = vmatprep.subr.bf16.mxu0 %v1756_v17  ;;  %v2104_v29 = vld [vmem:[%s2477_s4] sm:$0xff] }
  0x32   : > { %v601_v30 = vmul.f32 256.0, %v2104_v29  ;;  %v603_v31 = vmul.f32 2.0, %v2104_v29  ;;  %v606_v32 = vmul.f32 %v2104_v29, %v2104_v29 }
  0x34   : > { %1759 = vmatpush1.bf16.msra.mxu0 %v1758_v20  ;;  %v607_v36 = vmul.f32 256.0, %v606_v32 }
  0x37   : > { %1733 = vmatmul.mubr.msk.f32.vlgmr.msra.gmra.mrb[0].mxu0 %vm515_vm0, %v514_v21 }
  0x38   : > { %1353 = vmatprep.mubr.f32.mxu0 %v1925_v8 }
 0x10a   : > { %v2091_v22 = vpop.f32.mrb[0].mxu0 }
 0x10b   : > { %v2093_v23 = vpop.f32.mrb[1].mxu0  ;;  %v593_v24 = vmul.f32 %v2091_v22, %v2091_v22 }
 0x10c   : > { %v595_v25 = vadd.f32 %v2093_v23, %v2091_v22  ;;  %v594_v26 = vmul.f32 %v2093_v23, %v2093_v23 }
 0x10e   : > { %596 = vadd.xlane.f32.xlu0 %v595_v25  ;;  %v598_v27 = vadd.f32 %v594_v26, %v593_v24 }
 0x112   : > { %599 = vadd.xlane.f32.xlu0 %v598_v27 }
 0x19b   : > { %v597_v33 = vpop.xlane.xlu0 %596 }
 0x19c   : > { %v602_v34 = vadd.f32 %v601_v30, %v597_v33  ;;  %v604_v35 = vmul.f32 %v603_v31, %v597_v33 }
 0x19e   : > { %v610_v37 = vsel %vm609_vm1, %v602_v34, 0.0  ;;  %v632_v38 = vrot.slane %v602_v34, 2  ;;  %v658_v39 = vrot.slane %v602_v34, 4  ;;  %v683_v40 = vrot.slane %v602_v34, 6 }
 0x19f   : > { %v611_v41 = vrot.slane %v610_v37, 4  ;;  %v600_v42 = vpop.xlane.xlu0 %599 }
 0x1a0   : > { %v634_v43 = vsel %vm609_vm1, %v632_v38, 0.0  ;;  %v660_v44 = vsel %vm609_vm1, %v658_v39, 0.0  ;;  %v685_v45 = vsel %vm609_vm1, %v683_v40, 0.0  ;;  %v605_v46 = vadd.f32 %v604_v35, %v600_v42 }
 0x1a1   : > { %v612_v47 = vadd.f32 %v611_v41, %v610_v37  ;;  %v635_v48 = vrot.slane %v634_v43, 4  ;;  %v661_v49 = vrot.slane %v660_v44, 4  ;;  %v686_v50 = vrot.slane %v685_v45, 4 }
 0x1a2   : > { %v608_v51 = vadd.f32 %v607_v36, %v605_v46 }
 0x1a3   : > { %v613_v52 = vrot.slane %v612_v47, 2  ;;  %v636_v53 = vadd.f32 %v635_v48, %v634_v43  ;;  %v662_v54 = vadd.f32 %v661_v49, %v660_v44  ;;  %v687_v55 = vadd.f32 %v686_v50, %v685_v45 }
 0x1a4   : > { %v618_v56 = vsel %vm609_vm1, %v608_v51, 0.0  ;;  %v643_v57 = vrot.slane %v608_v51, 2  ;;  %v668_v58 = vrot.slane %v608_v51, 4  ;;  %v693_v59 = vrot.slane %v608_v51, 6 }
 0x1a5   : > { %v614_v60 = vadd.f32 %v613_v52, %v612_v47  ;;  %v637_v61 = vrot.slane %v636_v53, 2  ;;  %v663_v62 = vrot.slane %v662_v54, 2  ;;  %v688_v63 = vrot.slane %v687_v55, 2 }
 0x1a6   : > { %v619_v0 = vrot.slane %v618_v56, 4  ;;  %v645_v1 = vsel %vm609_vm1, %v643_v57, 0.0  ;;  %v670_v2 = vsel %vm609_vm1, %v668_v58, 0.0  ;;  %v695_v3 = vsel %vm609_vm1, %v693_v59, 0.0 }
 0x1a7   : > { %v615_v4 = vrot.slane %v614_v60, 1  ;;  %v638_v5 = vadd.f32 %v637_v61, %v636_v53  ;;  %v664_v6 = vadd.f32 %v663_v62, %v662_v54  ;;  %v646_v7 = vrot.slane %v645_v1, 4 }
 0x1a8   : > { %v620_v9 = vadd.f32 %v619_v0, %v618_v56  ;;  %v671_v10 = vrot.slane %v670_v2, 4  ;;  %v696_v11 = vrot.slane %v695_v3, 4  ;;  %v689_v12 = vadd.f32 %v688_v63, %v687_v55 }
 0x1a9   : > { %v616_v13 = vadd.f32 %v615_v4, %v614_v60  ;;  %v639_v14 = vrot.slane %v638_v5, 1  ;;  %v647_v15 = vadd.f32 %v646_v7, %v645_v1  ;;  %v665_v16 = vrot.slane %v664_v6, 1  ;;  %v591_v7 = vld [vmem:[%s2456_s5] sm:$0xff] }
 0x1aa   : > { %v621_v17 = vrot.slane %v620_v9, 2  ;;  %v672_v18 = vadd.f32 %v671_v10, %v670_v2  ;;  %v697_v19 = vadd.f32 %v696_v11, %v695_v3  ;;  %v690_v20 = vrot.slane %v689_v12, 1 }
 0x1ab   : > { %v648_v21 = vrot.slane %v647_v15, 2  ;;  %v640_v24 = vadd.f32 %v639_v14, %v638_v5  ;;  %v666_v25 = vadd.f32 %v665_v16, %v664_v6  ;;  %v617_v32 = vmul.f32 0.001953125, %v616_v13  ;;  %v592_v16 = vld [vmem:[%s2457_s6] sm:$0xff] }
 0x1ac   : > { %v622_v26 = vadd.f32 %v621_v17, %v620_v9  ;;  %v673_v27 = vrot.slane %v672_v18, 2  ;;  %v698_v28 = vrot.slane %v697_v19, 2  ;;  %v691_v30 = vadd.f32 %v690_v20, %v689_v12 }
 0x1ad   : > { %v649_v31 = vadd.f32 %v648_v21, %v647_v15  ;;  %v641_v37 = vmul.f32 0.001953125, %v640_v24  ;;  %v667_v38 = vmul.f32 0.001953125, %v666_v25  ;;  %v626_v44 = vmul.f32 %v617_v32, %v617_v32 }
 0x1ae   : > { %v623_v33 = vrot.slane %v622_v26, 1  ;;  %v674_v34 = vadd.f32 %v673_v27, %v672_v18  ;;  %v699_v35 = vadd.f32 %v698_v28, %v697_v19  ;;  %v692_v42 = vmul.f32 0.001953125, %v691_v30  ;;  %v2141_v30 = vld [vmem:[%s2464_s13] sm:$0xff] }
 0x1af   : > { %v650_v36 = vrot.slane %v649_v31, 1  ;;  %v653_v49 = vmul.f32 %v641_v37, %v641_v37  ;;  %v678_v50 = vmul.f32 %v667_v38, %v667_v38  ;;  %v709_v2 = vsel %vm708_vm2, %v617_v32, %v641_v37 }
 0x1b0   : > { %v624_v39 = vadd.f32 %v623_v33, %v622_v26  ;;  %v675_v40 = vrot.slane %v674_v34, 1  ;;  %v700_v41 = vrot.slane %v699_v35, 1  ;;  %v703_v54 = vmul.f32 %v692_v42, %v692_v42 }
 0x1b1   : > { %v651_v43 = vadd.f32 %v650_v36, %v649_v31  ;;  %v711_v3 = vsel %vm710_vm3, %v709_v2, %v667_v38  ;;  %v2146_v31 = vld [vmem:[%s2464_s13 + $0x8] sm:$0xff] }
 0x1b2   : > { %v625_v45 = vmul.f32 0.001953125, %v624_v39  ;;  %v676_v46 = vadd.f32 %v675_v40, %v674_v34  ;;  %v701_v47 = vadd.f32 %v700_v41, %v699_v35  ;;  %v713_v9 = vsel %vm712_vm4, %v711_v3, %v692_v42 }
 0x1b3   : > { %v652_v48 = vmul.f32 0.001953125, %v651_v43  ;;  %v718_v15 = vsub.f32 %v2104_v29, %v713_v9 }
 0x1b4   : > { %v627_v51 = vsub.f32 %v625_v45, %v626_v44  ;;  %v677_v52 = vmul.f32 0.001953125, %v676_v46  ;;  %v702_v53 = vmul.f32 0.001953125, %v701_v47 }
 0x1b5   : > { %v654_v55 = vsub.f32 %v652_v48, %v653_v49 }
 0x1b6   : > { %v628_v56 = vmax.f32 %v627_v51, 0.0  ;;  %v679_v57 = vsub.f32 %v677_v52, %v678_v50  ;;  %v704_v58 = vsub.f32 %v702_v53, %v703_v54  ;;  %v1734_v51 = vld [vmem:[%s2478_s2 + $0x8] sm:$0xff] }
 0x1b7   : > { %v655_v59 = vmax.f32 %v654_v55, 0.0 }
 0x1b8   : > { %v629_v60 = vadd.f32 1e-05, %v628_v56  ;;  %v680_v61 = vmax.f32 %v679_v57, 0.0  ;;  %v705_v62 = vmax.f32 %v704_v58, 0.0 }
 0x1b9   : > { %v656_v63 = vadd.f32 1e-05, %v655_v59 }
 0x1ba   : > { %1829 = vrsqrt.f32 %v629_v60  ;;  %v681_v0 = vadd.f32 1e-05, %v680_v61  ;;  %v706_v1 = vadd.f32 1e-05, %v705_v62 }
 0x1bb   : > { %1831 = vrsqrt.f32 %v656_v63 }
 0x1bc   : > { %1833 = vrsqrt.f32 %v681_v0 }
 0x1bd   : > { %1835 = vrsqrt.f32 %v706_v1 }
 0x1c4   : > { %v1830_v4 = vpop.eup %1829 }
 0x1c5   : > { %v1832_v5 = vpop.eup %1831 }
 0x1c6   : > { %v1834_v6 = vpop.eup %1833  ;;  %v714_v10 = vsel %vm708_vm2, %v1830_v4, %v1832_v5 }
 0x1c7   : > { %v1836_v11 = vpop.eup %1835  ;;  %v715_v12 = vsel %vm710_vm3, %v714_v10, %v1834_v6 }
 0x1c8   : > { %v716_v13 = vsel %vm712_vm4, %v715_v12, %v1836_v11 }
 0x1c9   : > { %v717_v14 = vmul.f32 %v716_v13, %v591_v7 }
 0x1cb   : > { %723 = vperm.xlu1 %1827, %v717_v14   ;;  %v719_v17 = vmul.f32 %v718_v15, %v717_v14 }
 0x1cd   : > { %v720_v18 = vadd.f32 %v719_v17, %v592_v16 }
 0x1cf   : > { %730 = vperm.xlu1 %1827, %v720_v18  }
 0x24a   : > { %v724_v19 = vpop.permute.xlu1 %723 }
 0x24b   : > { %v726_v20 = vmul.f32 %v724_v19, %v2091_v22  ;;  %v727_v21 = vmul.f32 %v724_v19, %v2093_v23  ;;  %v749_v22 = vlaneseq }
 0x24d   : > { %v2135_v23 = vshrl.u32 %v749_v22, 7 }
 0x24e   : > { %v731_v24 = vpop.permute.xlu1 %730 }
 0x24f   : > { %v733_v25 = vadd.f32 %v731_v24, %v726_v20  ;;  %v734_v26 = vadd.f32 %v731_v24, %v727_v21  ;;  %v812_v29 = vsub.s32 3, %v2135_v23  ;;  %v832_v40 = vsub.s32 5, %v2135_v23 }
 0x250   : > { %v751_v54 = vsub.s32 0, %v2135_v23  ;;  %v771_v55 = vsub.s32 1, %v2135_v23  ;;  %v791_v58 = vsub.s32 2, %v2135_v23  ;;  %v1003_v16 = vsub.s32 6, %v2135_v23 }
 0x251   : > { %v735_v27 = vmax.f32 %v733_v25, 0.0  ;;  %v736_v28 = vmax.f32 %v734_v26, 0.0  ;;  %v813_v32 = vrot.slane %v2141_v30, %v812_v29  ;;  %v817_v33 = vrot.slane %v2146_v31, %v812_v29  ;;  %v799_v25 = vld [vmem:[%s2478_s2] sm:$0xff] }
 0x252   : > { %v833_v44 = vrot.slane %v2141_v30, %v832_v40  ;;  %v837_v45 = vrot.slane %v2146_v31, %v832_v40  ;;  %v752_v57 = vrot.slane %v2141_v30, %v751_v54  ;;  %v756_v60 = vrot.slane %v2146_v31, %v751_v54  ;;  %v2203_v54 = vld [vmem:[%s2458_s7] sm:$0xff] }
 0x253   : > { %800 = vrot.lane.b32.xlu0 %v736_v28, %s1927_s28  ;;  %803 = vrot.lane.b32.xlu1 %v735_v27, %s1927_s28  ;;  %v772_v61 = vrot.slane %v2141_v30, %v771_v55  ;;  %v776_v62 = vrot.slane %v2146_v31, %v771_v55  ;;  %v796_v4 = vrot.slane %v2146_v31, %v791_v58  ;;  %v1023_v19 = vsub.s32 7, %v2135_v23 }
 0x254   : > { %v792_v14 = vrot.slane %v2141_v30, %v791_v58  ;;  %v1004_v24 = vrot.slane %v2141_v30, %v1003_v16  ;;  %v1140_v55 = vmul.f32 256.0, %v2203_v54 }
 0x255   : > { %v1028_v22 = vrot.slane %v2146_v31, %v1023_v19 }
 0x257   : > { %762 = vrot.lane.b32.xlu0 %v735_v27, %s2468_s20  ;;  %820 = vrot.lane.b32.xlu1 %v735_v27, %s1929_s21 }
 0x25b   : > { %782 = vrot.lane.b32.xlu0 %v735_v27, %s1930_s18  ;;  %822 = vrot.lane.b32.xlu1 %v736_v28, %s1929_s21  ;;  %s2480_s21 = sand.u32 1, %s1915_s30  }
 0x25f   : > { %993 = vrot.lane.b32.xlu0 %v736_v28, %s1931_s25  ;;  %738 = vrot.lane.b32.xlu1 %v736_v28, %s1932_s17 }
 0x263   : > { %1013 = vrot.lane.b32.xlu0 %v736_v28, %s1933_s0  ;;  %742 = vrot.lane.b32.xlu1 %v735_v27, %s1932_s17  ;;  %s2408_s17 = scalar_lea.sflag [#allocation4], %s2480_s21 }
 0x267   : > { %1033 = vrot.lane.b32.xlu0 %v736_v28, %s1934_s1  ;;  %759 = vrot.lane.b32.xlu1 %v736_v28, %s2468_s20 }
 0x26b   : > { %779 = vrot.lane.b32.xlu1 %v736_v28, %s1930_s18 }
 0x26f   : > { %991 = vrot.lane.b32.xlu1 %v735_v27, %s1931_s25 }
 0x273   : > { %1011 = vrot.lane.b32.xlu1 %v735_v27, %s1933_s0  ;;  %s2374_s0 = scalar_lea.vmem [#allocation3], %s2072_s26 }
 0x274   : > { %s1656_s26 = sshll.u32 %s2374_s0, 4  ;;  %s2397_s26 = int_to_ptr.vmem [resolvable:$true] %s1656_s26 }
 0x277   : > { %1031 = vrot.lane.b32.xlu1 %v735_v27, %s1934_s1  ;;  %s2479_s1 = sadd.s32 4294967295, %s1923_s16  }
 0x278   : > { %s1751_s4 = sshll.u32 %s2479_s1, 8  ;;  %s1861_s1 = scalar_lea.vmem %s2397_s26, 1024 }
 0x279   : > { %s2402_s28 = scalar_lea.hbm %s2465_s14, %s1751_s4  ;;  %p1862_p13 = scmp.ne.s32.totalorder %s2397_s26, %s1861_s1 }
 0x27b   : > { %p1863_p0 = pnand %p1862_p13, %p2051_p6 }
 0x27d   : > { %p1864_p1 = pneg %p1863_p0 }
 0x2c5   : > { %v801_v34 = vpop.permute.xlu0 %800  ;;  %v804_v35 = vpop.permute.xlu1 %803 }
 0x2c6   : > { %v806_v36 = vsel %vm805_vm5, %v804_v35, %v801_v34  ;;  %v809_v37 = vsel %vm805_vm5, %v801_v34, %v804_v35 }
 0x2c7   : > { %v818_v38 = vmul.f32 %v813_v32, %v809_v37  ;;  %v819_v39 = vmul.f32 %v817_v33, %v806_v36 }
 0x2c9   : > { %v821_v41 = vpop.permute.xlu1 %820  ;;  %v1760_v42 = vpack.c.bf16 %v736_v28, %v819_v39  ;;  %v1762_v43 = vpack.c.bf16 %v735_v27, %v818_v38  ;;  %v763_v52 = vpop.permute.xlu0 %762  ;;  %v1008_v27 = vrot.slane %v2146_v31, %v1003_v16  ;;  %v1024_v28 = vrot.slane %v2141_v30, %v1023_v19  ;;  %v1738_v30 = vld [vmem:[%s2464_s13 + $0x18] ss:$0 sm:$0xff] }
 0x2cb   : > { %1761 = vmatprep.subr.bf16.mxu1 %v1760_v42 }
 0x2cc   : > { %1763 = vmatpush1.bf16.msra.mxu1 %v1762_v43  ;;  %v1737_v43 = vld [vmem:[%s2464_s13 + $0x10] ss:$0 sm:$0xff] }
 0x2cd   : > { %v823_v46 = vpop.permute.xlu1 %822  ;;  %v783_v59 = vpop.permute.xlu0 %782 }
 0x2ce   : > { %v825_v47 = vsel %vm824_vm6, %v821_v41, %v823_v46  ;;  %v829_v48 = vsel %vm824_vm6, %v823_v46, %v821_v41 }
 0x2cf   : > { %v838_v49 = vmul.f32 %v833_v44, %v825_v47  ;;  %v839_v50 = vmul.f32 %v837_v45, %v829_v48  ;;  %v1739_v47 = vld [vmem:[%s2478_s2 + $0x10] sm:$0xff] }
 0x2d1   : > { %850 = vmatprep.subr.mxu1 %v839_v50  ;;  %v739_v53 = vpop.permute.xlu1 %738  ;;  %v994_v10 = vpop.permute.xlu0 %993 }
 0x2d2   : > { %851 = vmatpush1.msra.mxu1 %v838_v49 }
 0x2d3   : > { %1735 = vmatmul.mubr.msk.f32.vlgmr.msra.gmra.mrb[0].mxu1 %vm842_vm7, %v1734_v51 }
 0x2d4   : > { %984 = vmatprep.mubr.f32.mxu1 %v1925_v8 }
 0x2d5   : > { %v743_v56 = vpop.permute.xlu1 %742  ;;  %v1014_v26 = vpop.permute.xlu0 %1013 }
 0x2d6   : > { %v745_v63 = vsel %vm744_vm8, %v743_v56, %v739_v53  ;;  %v748_v0 = vsel %vm744_vm8, %v739_v53, %v743_v56  ;;  %v1142_v56 = vmul.f32 2.0, %v2203_v54 }
 0x2d7   : > { %v757_v5 = vmul.f32 %v752_v57, %v748_v0  ;;  %v758_v6 = vmul.f32 %v756_v60, %v745_v63  ;;  %v1145_v57 = vmul.f32 %v2203_v54, %v2203_v54 }
 0x2d9   : > { %v760_v1 = vpop.permute.xlu1 %759  ;;  %v1034_v31 = vpop.permute.xlu0 %1033 }
 0x2da   : > { %v765_v2 = vsel %vm764_vm9, %v763_v52, %v760_v1  ;;  %v768_v3 = vsel %vm764_vm9, %v760_v1, %v763_v52 }
 0x2db   : > { %v777_v7 = vmul.f32 %v772_v61, %v768_v3  ;;  %v778_v9 = vmul.f32 %v776_v62, %v765_v2  ;;  %v1146_v61 = vmul.f32 256.0, %v1145_v57 }
 0x2dd   : > { %v1766_v11 = vpack.c.bf16 %v777_v7, %v757_v5  ;;  %v780_v12 = vpop.permute.xlu1 %779  ;;  %v1764_v13 = vpack.c.bf16 %v778_v9, %v758_v6 }
 0x2de   : > { %v785_v15 = vsel %vm784_vm10, %v783_v59, %v780_v12  ;;  %v788_v17 = vsel %vm784_vm10, %v780_v12, %v783_v59 }
 0x2df   : > { %v798_v18 = vmul.f32 %v796_v4, %v785_v15  ;;  %1765 = vmatprep.subr.bf16.mxu1 %v1764_v13  ;;  %v797_v21 = vmul.f32 %v792_v14, %v788_v17 }
 0x2e0   : > { %1767 = vmatpush1.bf16.msra.mxu1 %v1766_v11 }
 0x2e1   : > { %924 = vmatprep.subr.mxu1 %v798_v18  ;;  %v992_v20 = vpop.permute.xlu1 %991 }
 0x2e2   : > { %v996_v23 = vsel %vm995_vm11, %v992_v20, %v994_v10  ;;  %v1000_v29 = vsel %vm995_vm11, %v994_v10, %v992_v20 }
 0x2e3   : > { %v1009_v35 = vmul.f32 %v1004_v24, %v996_v23  ;;  %v1010_v36 = vmul.f32 %v1008_v27, %v1000_v29 }
 0x2e4   : > { %925 = vmatpush1.msra.mxu1 %v797_v21 }
 0x2e5   : > { %v1012_v32 = vpop.permute.xlu1 %1011  ;;  %1736 = vmatmul.mubr.msk.f32.vlgmr.msra.gmra.mrb[0].mxu1 %vm842_vm7, %v799_v25 }
 0x2e6   : > { %v1016_v33 = vsel %vm1015_vm12, %v1012_v32, %v1014_v26  ;;  %v1020_v34 = vsel %vm1015_vm12, %v1014_v26, %v1012_v32  ;;  %1120 = vmatprep.mubr.f32.mxu1 %v1925_v8 }
 0x2e7   : > { %v1029_v37 = vmul.f32 %v1024_v28, %v1016_v33  ;;  %v1030_v38 = vmul.f32 %v1028_v22, %v1020_v34 }
 0x2e9   : > { %v1770_v39 = vpack.c.bf16 %v1029_v37, %v1009_v35  ;;  %v1032_v40 = vpop.permute.xlu1 %1031  ;;  %v1768_v41 = vpack.c.bf16 %v1030_v38, %v1010_v36 }
 0x2ea   : > { %v1040_v42 = vsel %vm1035_vm13, %v1034_v31, %v1032_v40  ;;  %v1036_v44 = vsel %vm1035_vm13, %v1032_v40, %v1034_v31 }
 0x2eb   : > { %v1050_v45 = vmul.f32 %v1738_v30, %v1040_v42  ;;  %1769 = vmatprep.subr.bf16.mxu1 %v1768_v41  ;;  %v1049_v46 = vmul.f32 %v1737_v43, %v1036_v44 }
 0x2ec   : > { %1771 = vmatpush1.bf16.msra.mxu1 %v1770_v39 }
 0x2ed   : > { %1060 = vmatprep.subr.mxu1 %v1050_v45 }
 0x2f0   : > { %1061 = vmatpush1.msra.mxu1 %v1049_v46 }
 0x2f1   : > { %1740 = vmatmul.mubr.msk.f32.vlgmr.msra.gmra.mrb[0].mxu1 %vm842_vm7, %v1739_v47 }
 0x3c4   : > { %v2190_v48 = vpop.f32.mrb[0].mxu1 }
 0x3c5   : > { %v2192_v49 = vpop.f32.mrb[1].mxu1  ;;  %v1132_v50 = vmul.f32 %v2190_v48, %v2190_v48 }
 0x3c6   : > { %v1133_v51 = vmul.f32 %v2192_v49, %v2192_v49  ;;  %v1134_v52 = vadd.f32 %v2192_v49, %v2190_v48 }
 0x3c8   : > { %1135 = vadd.xlane.f32.xlu1 %v1134_v52  ;;  %v1137_v53 = vadd.f32 %v1133_v51, %v1132_v50 }
 0x3ca   : > { %1138 = vadd.xlane.f32.xlu0 %v1137_v53 }
 0x455   : > { %v1136_v58 = vpop.xlane.xlu1 %1135 }
 0x456   : > { %v1141_v59 = vadd.f32 %v1140_v55, %v1136_v58  ;;  %v1143_v60 = vmul.f32 %v1142_v56, %v1136_v58 }
 0x457   : > { %v1139_v62 = vpop.xlane.xlu0 %1138 }
 0x458   : > { %v1148_v63 = vsel %vm609_vm1, %v1141_v59, 0.0  ;;  %v1170_v0 = vrot.slane %v1141_v59, 2  ;;  %v1196_v1 = vrot.slane %v1141_v59, 4  ;;  %v1221_v2 = vrot.slane %v1141_v59, 6 }
 0x459   : > { %v1149_v3 = vrot.slane %v1148_v63, 4  ;;  %v1144_v4 = vadd.f32 %v1143_v60, %v1139_v62 }
 0x45a   : > { %v1172_v5 = vsel %vm609_vm1, %v1170_v0, 0.0  ;;  %v1198_v6 = vsel %vm609_vm1, %v1196_v1, 0.0  ;;  %v1223_v7 = vsel %vm609_vm1, %v1221_v2, 0.0 }
 0x45b   : > { %v1150_v9 = vadd.f32 %v1149_v3, %v1148_v63  ;;  %v1173_v10 = vrot.slane %v1172_v5, 4  ;;  %v1199_v11 = vrot.slane %v1198_v6, 4  ;;  %v1224_v12 = vrot.slane %v1223_v7, 4 }
 0x45c   : > { %v1147_v13 = vadd.f32 %v1146_v61, %v1144_v4 }
 0x45d   : > { %v1151_v14 = vrot.slane %v1150_v9, 2  ;;  %v1174_v15 = vadd.f32 %v1173_v10, %v1172_v5  ;;  %v1200_v16 = vadd.f32 %v1199_v11, %v1198_v6  ;;  %v1225_v17 = vadd.f32 %v1224_v12, %v1223_v7 }
 0x45e   : > { %v1156_v18 = vsel %vm609_vm1, %v1147_v13, 0.0  ;;  %v1181_v19 = vrot.slane %v1147_v13, 2  ;;  %v1206_v20 = vrot.slane %v1147_v13, 4  ;;  %v1231_v21 = vrot.slane %v1147_v13, 6 }
 0x45f   : > { %v1152_v24 = vadd.f32 %v1151_v14, %v1150_v9  ;;  %v1175_v25 = vrot.slane %v1174_v15, 2  ;;  %v1201_v26 = vrot.slane %v1200_v16, 2  ;;  %v1226_v27 = vrot.slane %v1225_v17, 2 }
 0x460   : > { %v1157_v28 = vrot.slane %v1156_v18, 4  ;;  %v1183_v22 = vsel %vm609_vm1, %v1181_v19, 0.0  ;;  %v1208_v23 = vsel %vm609_vm1, %v1206_v20, 0.0  ;;  %v1233_v29 = vsel %vm609_vm1, %v1231_v21, 0.0 }
 0x461   : > { %v1153_v32 = vrot.slane %v1152_v24, 1  ;;  %v1176_v33 = vadd.f32 %v1175_v25, %v1174_v15  ;;  %v1202_v34 = vadd.f32 %v1201_v26, %v1200_v16  ;;  %v1227_v35 = vadd.f32 %v1226_v27, %v1225_v17 }
 0x462   : > { %v1158_v36 = vadd.f32 %v1157_v28, %v1156_v18  ;;  %v1184_v37 = vrot.slane %v1183_v22, 4  ;;  %v1209_v38 = vrot.slane %v1208_v23, 4  ;;  %v1234_v30 = vrot.slane %v1233_v29, 4 }
 0x463   : > { %v1154_v31 = vadd.f32 %v1153_v32, %v1152_v24  ;;  %v1177_v39 = vrot.slane %v1176_v33, 1  ;;  %v1203_v40 = vrot.slane %v1202_v34, 1  ;;  %v1228_v41 = vrot.slane %v1227_v35, 1 }
 0x464   : > { %v1159_v42 = vrot.slane %v1158_v36, 2  ;;  %v1185_v43 = vadd.f32 %v1184_v37, %v1183_v22  ;;  %v1210_v44 = vadd.f32 %v1209_v38, %v1208_v23  ;;  %v1235_v45 = vadd.f32 %v1234_v30, %v1233_v29 }
 0x465   : > { %v1178_v46 = vadd.f32 %v1177_v39, %v1176_v33  ;;  %v1204_v47 = vadd.f32 %v1203_v40, %v1202_v34  ;;  %v1229_v50 = vadd.f32 %v1228_v41, %v1227_v35  ;;  %v1155_v56 = vmul.f32 0.001953125, %v1154_v31  ;;  %v1130_v35 = vld [vmem:[%s2459_s8] sm:$0xff] }
 0x466   : > { %v1160_v51 = vadd.f32 %v1159_v42, %v1158_v36  ;;  %v1186_v52 = vrot.slane %v1185_v43, 2  ;;  %v1211_v53 = vrot.slane %v1210_v44, 2  ;;  %v1236_v55 = vrot.slane %v1235_v45, 2  ;;  %v1131_v41 = vld [vmem:[%s2460_s9] sm:$0xff] }
 0x467   : > { %v1179_v61 = vmul.f32 0.001953125, %v1178_v46  ;;  %v1205_v62 = vmul.f32 0.001953125, %v1204_v47  ;;  %v1230_v63 = vmul.f32 0.001953125, %v1229_v50  ;;  %v1164_v4 = vmul.f32 %v1155_v56, %v1155_v56 }
 0x468   : > { %v1161_v57 = vrot.slane %v1160_v51, 1  ;;  %v1187_v58 = vadd.f32 %v1186_v52, %v1185_v43  ;;  %v1212_v59 = vadd.f32 %v1211_v53, %v1210_v44  ;;  %v1237_v60 = vadd.f32 %v1236_v55, %v1235_v45  ;;  %v1275_v55 = vld [vmem:[%s2454_s3 + $0x18] sm:$0xff] }
 0x469   : > { %v1191_v10 = vmul.f32 %v1179_v61, %v1179_v61  ;;  %v1216_v11 = vmul.f32 %v1205_v62, %v1205_v62  ;;  %v1241_v12 = vmul.f32 %v1230_v63, %v1230_v63  ;;  %v1246_v23 = vsel %vm708_vm2, %v1155_v56, %v1179_v61 }
 0x46a   : > { %v1162_v0 = vadd.f32 %v1161_v57, %v1160_v51  ;;  %v1188_v1 = vrot.slane %v1187_v58, 1  ;;  %v1213_v2 = vrot.slane %v1212_v59, 1  ;;  %v1238_v3 = vrot.slane %v1237_v60, 1 }
 0x46b   : > { %v1247_v29 = vsel %vm710_vm3, %v1246_v23, %v1205_v62 }
 0x46c   : > { %v1163_v5 = vmul.f32 0.001953125, %v1162_v0  ;;  %v1189_v6 = vadd.f32 %v1188_v1, %v1187_v58  ;;  %v1214_v7 = vadd.f32 %v1213_v2, %v1212_v59  ;;  %v1239_v9 = vadd.f32 %v1238_v3, %v1237_v60 }
 0x46d   : > { %v1248_v37 = vsel %vm712_vm4, %v1247_v29, %v1230_v63 }
 0x46e   : > { %v1165_v13 = vsub.f32 %v1163_v5, %v1164_v4  ;;  %v1190_v14 = vmul.f32 0.001953125, %v1189_v6  ;;  %v1215_v15 = vmul.f32 0.001953125, %v1214_v7  ;;  %v1240_v16 = vmul.f32 0.001953125, %v1239_v9 }
 0x46f   : > { %v1253_v40 = vsub.f32 %v2203_v54, %v1248_v37  ;;  %v1272_v54 = vld [vmem:[%s2454_s3] sm:$0xff] }
 0x470   : > { %v1166_v17 = vmax.f32 %v1165_v13, 0.0  ;;  %v1192_v18 = vsub.f32 %v1190_v14, %v1191_v10  ;;  %v1217_v19 = vsub.f32 %v1215_v15, %v1216_v11  ;;  %v1242_v20 = vsub.f32 %v1240_v16, %v1241_v12  ;;  %v2290_v16 = vld [vmem:[%s2461_s10] sm:$0xff] }
 0x472   : > { %v1167_v21 = vadd.f32 1e-05, %v1166_v17  ;;  %v1193_v24 = vmax.f32 %v1192_v18, 0.0  ;;  %v1218_v25 = vmax.f32 %v1217_v19, 0.0  ;;  %v1243_v26 = vmax.f32 %v1242_v20, 0.0  ;;  %v2296_v18 = vld [vmem:[%s2461_s10 + $0x8] sm:$0xff] }
 0x473   : > { %v1422_v17 = vmul.f32 256.0, %v2290_v16  ;;  %v1430_v19 = vmul.f32 2.0, %v2290_v16  ;;  %v1442_v20 = vmul.f32 %v2290_v16, %v2290_v16  ;;  %v1443_v23 = vmul.f32 %v2296_v18, %v2296_v18 }
 0x474   : > { %v1194_v27 = vadd.f32 1e-05, %v1193_v24  ;;  %v1219_v28 = vadd.f32 1e-05, %v1218_v25  ;;  %v1244_v22 = vadd.f32 1e-05, %v1243_v26  ;;  %1837 = vrsqrt.f32 %v1167_v21 }
 0x475   : > { %v1423_v25 = vmul.f32 256.0, %v2296_v18  ;;  %v1431_v26 = vmul.f32 2.0, %v2296_v18 }
 0x476   : > { %1839 = vrsqrt.f32 %v1194_v27 }
 0x477   : > { %1841 = vrsqrt.f32 %v1219_v28 }
 0x478   : > { %1843 = vrsqrt.f32 %v1244_v22  ;;  %v1446_v22 = vmul.f32 256.0, %v1442_v20 }
 0x47e   : > { %v1838_v32 = vpop.eup %1837 }
 0x480   : > { %v1840_v33 = vpop.eup %1839 }
 0x481   : > { %v1842_v34 = vpop.eup %1841  ;;  %v1249_v36 = vsel %vm708_vm2, %v1838_v32, %v1840_v33 }
 0x482   : > { %v1844_v38 = vpop.eup %1843  ;;  %v1250_v30 = vsel %vm710_vm3, %v1249_v36, %v1842_v34 }
 0x483   : > { %v1251_v31 = vsel %vm712_vm4, %v1250_v30, %v1844_v38  ;;  %v2309_v38 = vld [vmem:[%s2461_s10 + $0x10] sm:$0xff] }
 0x484   : > { %v1252_v39 = vmul.f32 %v1251_v31, %v1130_v35 }
 0x486   : > { %1258 = vperm.xlu0 %1828, %v1252_v39   ;;  %v1254_v42 = vmul.f32 %v1253_v40, %v1252_v39  ;;  %v1447_v39 = vmul.f32 256.0, %v1443_v23 }
 0x488   : > { %v1255_v43 = vadd.f32 %v1254_v42, %v1131_v41 }
 0x48a   : > { %1265 = vperm.xlu1 %1827, %v1255_v43   ;;  %v2315_v43 = vld [vmem:[%s2461_s10 + $0x18] sm:$0xff] }
 0x505   : > { %v1259_v44 = vpop.permute.xlu0 %1258 }
 0x506   : > { %v1261_v45 = vmul.f32 %v1259_v44, %v2190_v48  ;;  %v1262_v46 = vmul.f32 %v1259_v44, %v2192_v49  ;;  %v1273_v48 = vld [vmem:[%s2454_s3 + $0x8] sm:$0xff]  ;;  %v1274_v49 = vld [vmem:[%s2454_s3 + $0x10] sm:$0xff] }
 0x509   : > { %v1266_v47 = vpop.permute.xlu1 %1265 }
 0x50a   : > { %v1268_v50 = vadd.f32 %v1266_v47, %v1261_v45  ;;  %v1269_v51 = vadd.f32 %v1266_v47, %v1262_v46  ;;  %v1424_v46 = vmul.f32 256.0, %v2309_v38 }
 0x50c   : > { %v1270_v52 = vmax.f32 %v1268_v50, 0.0  ;;  %v1271_v53 = vmax.f32 %v1269_v51, 0.0 }
 0x50e   : > { %1289 = vmatprep.subr.mxu0 %v1271_v53  ;;  %v1425_v53 = vmul.f32 256.0, %v2315_v43 }
 0x50f   : > { %1290 = vmatpush1.msra.mxu0 %v1270_v52 }
 0x510   : > { %1741 = vmatmul.mubr.msk.f32.vlgmr.msra.gmra.mrb[2].mxu0 %vm1276_vm14, %v1272_v54 }
 0x511   : > { %1359 = vmatprep.mubr.f32.mxu0 %v1925_v8 }
 0x514   : > { %1742 = vmatmul.mubr.msk.f32.gmra.mrb[4].mxu0 %vm1276_vm14, %v1273_v48 }
 0x515   : > { %1365 = vmatprep.mubr.f32.mxu0 %v1925_v8 }
 0x518   : > { %1743 = vmatmul.mubr.msk.f32.gmra.mrb[6].mxu0 %vm1276_vm14, %v1274_v49 }
 0x519   : > { %1371 = vmatprep.mubr.f32.mxu0 %v1925_v8 }
 0x51c   : > { %1744 = vmatmul.mubr.msk.f32.gmra.mrb[8].mxu0 %vm1276_vm14, %v1275_v55 }
 0x5e3   : > { %v2247_v56 = vpop.f32.mrb[2].mxu0 }
 0x5e4   : > { %v2249_v57 = vpop.f32.mrb[3].mxu0  ;;  %v1390_v58 = vmul.f32 %v2247_v56, %v2247_v56 }
 0x5e5   : > { %v1398_v59 = vadd.f32 %v2249_v57, %v2247_v56  ;;  %v1391_v60 = vmul.f32 %v2249_v57, %v2249_v57 }
 0x5e7   : > { %1399 = vadd.xlane.f32.xlu1 %v1398_v59  ;;  %v2257_v8 = vpop.f32.mrb[4].mxu0  ;;  %v1410_v61 = vadd.f32 %v1391_v60, %v1390_v58  ;;  %v1445_v58 = vmul.f32 %v2315_v43, %v2315_v43 }
 0x5e8   : > { %v2259_v62 = vpop.f32.mrb[5].mxu0  ;;  %v1392_v63 = vmul.f32 %v2257_v8, %v2257_v8 }
 0x5e9   : > { %v1401_v0 = vadd.f32 %v2259_v62, %v2257_v8  ;;  %v1393_v1 = vmul.f32 %v2259_v62, %v2259_v62 }
 0x5eb   : > { %1411 = vadd.xlane.f32.xlu1 %v1410_v61  ;;  %1402 = vadd.xlane.f32.xlu0 %v1401_v0  ;;  %v1413_v2 = vadd.f32 %v1393_v1, %v1392_v63  ;;  %v2267_v3 = vpop.f32.mrb[6].mxu0  ;;  %v1433_v61 = vmul.f32 2.0, %v2315_v43  ;;  %v1444_v63 = vmul.f32 %v2309_v38, %v2309_v38 }
 0x5ec   : > { %v2269_v4 = vpop.f32.mrb[7].mxu0  ;;  %v1394_v5 = vmul.f32 %v2267_v3, %v2267_v3 }
 0x5ed   : > { %v1404_v6 = vadd.f32 %v2269_v4, %v2267_v3  ;;  %v1395_v7 = vmul.f32 %v2269_v4, %v2269_v4 }
 0x5ef   : > { %1414 = vadd.xlane.f32.xlu1 %v1413_v2  ;;  %v2277_v9 = vpop.f32.mrb[8].mxu0  ;;  %v1416_v10 = vadd.f32 %v1395_v7, %v1394_v5 }
 0x5f0   : > { %v2279_v11 = vpop.f32.mrb[9].mxu0  ;;  %v1396_v12 = vmul.f32 %v2277_v9, %v2277_v9 }
 0x5f1   : > { %v1397_v13 = vmul.f32 %v2279_v11, %v2279_v11  ;;  %v1407_v14 = vadd.f32 %v2279_v11, %v2277_v9 }
 0x5f3   : > { %1405 = vadd.xlane.f32.xlu1 %v1404_v6  ;;  %v1419_v15 = vadd.f32 %v1397_v13, %v1396_v12  ;;  %v1432_v6 = vmul.f32 2.0, %v2309_v38 }
 0x5f5   : > { %1420 = vadd.xlane.f32.xlu0 %v1419_v15  ;;  %v1449_v15 = vmul.f32 256.0, %v1445_v58 }
 0x5f7   : > { %1408 = vadd.xlane.f32.xlu1 %v1407_v14 }
 0x5fb   : > { %1417 = vadd.xlane.f32.xlu1 %v1416_v10 }
 0x674   : > { %v1400_v21 = vpop.xlane.xlu1 %1399 }
 0x675   : > { %v1426_v24 = vadd.f32 %v1422_v17, %v1400_v21  ;;  %v1434_v27 = vmul.f32 %v1430_v19, %v1400_v21 }
 0x677   : > { %v1454_v28 = vsel %vm805_vm5, %v1426_v24, 0.0  ;;  %v1448_v24 = vmul.f32 256.0, %v1444_v63 }
 0x678   : > { %v1455_v29 = vrot.slane %v1454_v28, 4  ;;  %v1412_v32 = vpop.xlane.xlu1 %1411  ;;  %v1403_v33 = vpop.xlane.xlu0 %1402 }
 0x679   : > { %v1438_v34 = vadd.f32 %v1434_v27, %v1412_v32  ;;  %v1427_v35 = vadd.f32 %v1423_v25, %v1403_v33  ;;  %v1435_v36 = vmul.f32 %v1431_v26, %v1403_v33 }
 0x67a   : > { %v1456_v37 = vadd.f32 %v1455_v29, %v1454_v28 }
 0x67b   : > { %v1450_v30 = vadd.f32 %v1446_v22, %v1438_v34  ;;  %v1475_v31 = vsel %vm805_vm5, %v1427_v35, 0.0 }
 0x67c   : > { %v1457_v40 = vrot.slane %v1456_v37, 2  ;;  %v1476_v41 = vrot.slane %v1475_v31, 4  ;;  %v1415_v42 = vpop.xlane.xlu1 %1414 }
 0x67d   : > { %v1462_v44 = vsel %vm805_vm5, %v1450_v30, 0.0  ;;  %v1439_v45 = vadd.f32 %v1435_v36, %v1415_v42 }
 0x67e   : > { %v1458_v47 = vadd.f32 %v1457_v40, %v1456_v37  ;;  %v1463_v50 = vrot.slane %v1462_v44, 4  ;;  %v1477_v51 = vadd.f32 %v1476_v41, %v1475_v31 }
 0x67f   : > { %v1451_v52 = vadd.f32 %v1447_v39, %v1439_v45 }
 0x680   : > { %v1459_v54 = vrot.slane %v1458_v47, 1  ;;  %v1464_v48 = vadd.f32 %v1463_v50, %v1462_v44  ;;  %v1478_v49 = vrot.slane %v1477_v51, 2  ;;  %v1406_v55 = vpop.xlane.xlu1 %1405 }
 0x681   : > { %v1483_v59 = vsel %vm805_vm5, %v1451_v52, 0.0  ;;  %v1428_v60 = vadd.f32 %v1424_v46, %v1406_v55  ;;  %v1436_v22 = vmul.f32 %v1432_v6, %v1406_v55 }
 0x682   : > { %v1460_v0 = vadd.f32 %v1459_v54, %v1458_v47  ;;  %v1465_v1 = vrot.slane %v1464_v48, 2  ;;  %v1479_v2 = vadd.f32 %v1478_v49, %v1477_v51  ;;  %v1484_v5 = vrot.slane %v1483_v59, 4  ;;  %v1421_v17 = vpop.xlane.xlu0 %1420 }
 0x683   : > { %v1496_v7 = vsel %vm805_vm5, %v1428_v60, 0.0 }
 0x684   : > { %v1466_v10 = vadd.f32 %v1465_v1, %v1464_v48  ;;  %v1480_v12 = vrot.slane %v1479_v2, 1  ;;  %v1485_v13 = vadd.f32 %v1484_v5, %v1483_v59  ;;  %v1409_v14 = vpop.xlane.xlu1 %1408  ;;  %v1497_v19 = vrot.slane %v1496_v7, 4 }
 0x685   : > { %v1429_v20 = vadd.f32 %v1425_v53, %v1409_v14  ;;  %v1437_v21 = vmul.f32 %v1433_v61, %v1409_v14  ;;  %v2328_v25 = vmul.f32 0.00048828125, %v1460_v0 }
 0x686   : > { %v1467_v26 = vrot.slane %v1466_v10, 1  ;;  %v1481_v27 = vadd.f32 %v1480_v12, %v1479_v2  ;;  %v1486_v28 = vrot.slane %v1485_v13, 2  ;;  %v1498_v23 = vadd.f32 %v1497_v19, %v1496_v7 }
 0x687   : > { %v1517_v29 = vsel %vm805_vm5, %v1429_v20, 0.0  ;;  %v1441_v32 = vadd.f32 %v1437_v21, %v1421_v17  ;;  %v1470_v40 = vmul.f32 %v2328_v25, %v2328_v25 }
 0x688   : > { %v1468_v33 = vadd.f32 %v1467_v26, %v1466_v10  ;;  %v1487_v34 = vadd.f32 %v1486_v28, %v1485_v13  ;;  %v1518_v35 = vrot.slane %v1517_v29, 4  ;;  %v1418_v36 = vpop.xlane.xlu1 %1417  ;;  %v2331_v37 = vmul.f32 0.00048828125, %v1481_v27 }
 0x689   : > { %v1499_v30 = vrot.slane %v1498_v23, 2  ;;  %v1453_v31 = vadd.f32 %v1449_v15, %v1441_v32  ;;  %v1440_v39 = vadd.f32 %v1436_v22, %v1418_v36 }
 0x68a   : > { %v1469_v41 = vmul.f32 0.00048828125, %v1468_v33  ;;  %v1488_v42 = vrot.slane %v1487_v34, 1  ;;  %v1519_v44 = vadd.f32 %v1518_v35, %v1517_v29  ;;  %v1491_v54 = vmul.f32 %v2331_v37, %v2331_v37 }
 0x68b   : > { %v1500_v45 = vadd.f32 %v1499_v30, %v1498_v23  ;;  %v1525_v46 = vsel %vm805_vm5, %v1453_v31, 0.0  ;;  %v1452_v47 = vadd.f32 %v1448_v24, %v1440_v39  ;;  %v1382_v23 = vld [vmem:[%s2462_s11] sm:$0xff]  ;;  %v1383_v30 = vld [vmem:[%s2462_s11 + $0x8] sm:$0xff]  ;;  %v1542_v39 = vsub.f32 %v2290_v16, %v2328_v25 }
 0x68c   : > { %v1471_v50 = vsub.f32 %v1469_v41, %v1470_v40  ;;  %v1489_v51 = vadd.f32 %v1488_v42, %v1487_v34  ;;  %v1520_v52 = vrot.slane %v1519_v44, 2  ;;  %v1526_v53 = vrot.slane %v1525_v46, 4 }
 0x68d   : > { %v1504_v48 = vsel %vm805_vm5, %v1452_v47, 0.0  ;;  %v1501_v60 = vrot.slane %v1500_v45, 1  ;;  %v1543_v16 = vsub.f32 %v2296_v18, %v2331_v37 }
 0x68e   : > { %v1472_v49 = vmax.f32 %v1471_v50, 0.0  ;;  %v1490_v55 = vmul.f32 0.00048828125, %v1489_v51  ;;  %v1521_v58 = vadd.f32 %v1520_v52, %v1519_v44  ;;  %v1527_v59 = vadd.f32 %v1526_v53, %v1525_v46  ;;  %v1386_v46 = vld [vmem:[%s2463_s12] sm:$0xff]  ;;  %v1384_v50 = vld [vmem:[%s2462_s11 + $0x10] sm:$0xff] }
 0x68f   : > { %v1505_v61 = vrot.slane %v1504_v48, 4  ;;  %v1502_v12 = vadd.f32 %v1501_v60, %v1500_v45 }
 0x690   : > { %v1473_v63 = vadd.f32 1e-05, %v1472_v49  ;;  %v1492_v0 = vsub.f32 %v1490_v55, %v1491_v54  ;;  %v1522_v1 = vrot.slane %v1521_v58, 1  ;;  %v1528_v2 = vrot.slane %v1527_v59, 2  ;;  %v1388_v49 = vld [vmem:[%s2463_s12 + $0x10] sm:$0xff]  ;;  %v1385_v55 = vld [vmem:[%s2462_s11 + $0x18] sm:$0xff] }
 0x691   : > { %v1506_v5 = vadd.f32 %v1505_v61, %v1504_v48  ;;  %v1503_v21 = vmul.f32 0.00048828125, %v1502_v12  ;;  %v1387_v48 = vld [vmem:[%s2463_s12 + $0x8] sm:$0xff]  ;;  %v1389_v61 = vld [vmem:[%s2463_s12 + $0x18] sm:$0xff] }
 0x692   : > { %1845 = vrsqrt.f32 %v1473_v63  ;;  %v1493_v6 = vmax.f32 %v1492_v0, 0.0  ;;  %v1523_v7 = vadd.f32 %v1522_v1, %v1521_v58  ;;  %v1529_v10 = vadd.f32 %v1528_v2, %v1527_v59 }
 0x693   : > { %v1507_v13 = vrot.slane %v1506_v5, 2  ;;  %v1512_v29 = vmul.f32 %v1503_v21, %v1503_v21  ;;  %v1544_v53 = vsub.f32 %v2309_v38, %v1503_v21 }
 0x694   : > { %v1494_v14 = vadd.f32 1e-05, %v1493_v6  ;;  %v1524_v15 = vmul.f32 0.00048828125, %v1523_v7  ;;  %v1530_v17 = vrot.slane %v1529_v10, 1 }
 0x695   : > { %v1508_v19 = vadd.f32 %v1507_v13, %v1506_v5  ;;  %v1853_v13 = vld [vmem:[%s2077_s27] sm:$0xff] }
 0x696   : > { %1847 = vrsqrt.f32 %v1494_v14  ;;  %v1531_v20 = vadd.f32 %v1530_v17, %v1529_v10  ;;  %v1533_v26 = vmul.f32 %v1524_v15, %v1524_v15  ;;  %v1545_v38 = vsub.f32 %v2315_v43, %v1524_v15  ;;  %v1854_v15 = vld [vmem:[%s2077_s27 + $0x8] sm:$0xff] }
 0x697   : > { %v1509_v24 = vrot.slane %v1508_v19, 1 }
 0x698   : > { %v1532_v27 = vmul.f32 0.00048828125, %v1531_v20 }
 0x699   : > { %v1510_v28 = vadd.f32 %v1509_v24, %v1508_v19 }
 0x69a   : > { %v1534_v22 = vsub.f32 %v1532_v27, %v1533_v26 }
 0x69b   : > { %v1511_v32 = vmul.f32 0.00048828125, %v1510_v28 }
 0x69c   : > { %v1846_v33 = vpop.eup %1845  ;;  %v1535_v34 = vmax.f32 %v1534_v22, 0.0 }
 0x69d   : > { %v1513_v35 = vsub.f32 %v1511_v32, %v1512_v29  ;;  %v1538_v36 = vmul.f32 %v1846_v33, %v1382_v23 }
 0x69e   : > { %v1536_v41 = vadd.f32 1e-05, %v1535_v34 }
 0x69f   : > { %v1514_v31 = vmax.f32 %v1513_v35, 0.0  ;;  %1556 = vperm.xlu1 %1827, %v1538_v36   ;;  %v1546_v45 = vmul.f32 %v1542_v39, %v1538_v36 }
 0x6a0   : > { %v1848_v40 = vpop.eup %1847 }
 0x6a1   : > { %v1515_v42 = vadd.f32 1e-05, %v1514_v31  ;;  %v1539_v44 = vmul.f32 %v1848_v40, %v1383_v30  ;;  %v1550_v47 = vadd.f32 %v1546_v45, %v1386_v46  ;;  %v1857_v31 = vld [vmem:[%s2077_s27 + $0x20] sm:$0xff]  ;;  %v1858_v40 = vld [vmem:[%s2077_s27 + $0x28] sm:$0xff] }
 0x6a3   : > { %1849 = vrsqrt.f32 %v1515_v42  ;;  %1561 = vperm.xlu0 %1828, %v1539_v44   ;;  %v1547_v52 = vmul.f32 %v1543_v16, %v1539_v44 }
 0x6a4   : > { %1851 = vrsqrt.f32 %v1536_v41 }
 0x6a5   : > { %v1551_v37 = vadd.f32 %v1547_v52, %v1387_v48  ;;  %v1859_v52 = vld [vmem:[%s2077_s27 + $0x30] sm:$0xff] }
 0x6a7   : > { %1584 = vperm.xlu0 %1828, %v1550_v47  }
 0x6ad   : > { %v1850_v25 = vpop.eup %1849 }
 0x6ae   : > { %v1540_v51 = vmul.f32 %v1850_v25, %v1384_v50  ;;  %v1852_v54 = vpop.eup %1851 }
 0x6af   : > { %v1541_v59 = vmul.f32 %v1852_v54, %v1385_v55  ;;  %v1860_v54 = vld [vmem:[%s2077_s27 + $0x38] sm:$0xff] }
 0x6b0   : > { %1566 = vperm.xlu1 %1827, %v1540_v51   ;;  %v1548_v18 = vmul.f32 %v1544_v53, %v1540_v51 }
 0x6b1   : > { %v1549_v60 = vmul.f32 %v1545_v38, %v1541_v59 }
 0x6b2   : > { %v1552_v58 = vadd.f32 %v1548_v18, %v1388_v49 }
 0x6b3   : > { %v1553_v63 = vadd.f32 %v1549_v60, %v1389_v61 }
 0x6b4   : > { %1589 = vperm.xlu1 %1827, %v1551_v37   ;;  %1594 = vperm.xlu0 %1828, %v1552_v58  }
 0x6b8   : > { %1571 = vperm.xlu1 %1827, %v1541_v59  }
 0x6bc   : > { %1599 = vperm.xlu1 %1827, %v1553_v63  }
 0x71e   : > { %v1557_v0 = vpop.permute.xlu1 %1556 }
 0x71f   : > { %v1574_v2 = vmul.f32 %v1557_v0, %v2247_v56  ;;  %v1575_v5 = vmul.f32 %v1557_v0, %v2249_v57 }
 0x722   : > { %v1562_v1 = vpop.permute.xlu0 %1561 }
 0x723   : > { %v1576_v57 = vmul.f32 %v1562_v1, %v2257_v8  ;;  %v1577_v21 = vmul.f32 %v1562_v1, %v2259_v62  ;;  %v1855_v62 = vld [vmem:[%s2077_s27 + $0x10] sm:$0xff] }
 0x726   : > { %v1585_v6 = vpop.permute.xlu0 %1584 }
 0x727   : > { %v1602_v7 = vadd.f32 %v1585_v6, %v1574_v2  ;;  %v1603_v10 = vadd.f32 %v1585_v6, %v1575_v5 }
 0x729   : > { %v1610_v43 = vmax.f32 %v1602_v7, 0.0  ;;  %v1611_v12 = vmax.f32 %v1603_v10, 0.0 }
 0x72b   : > { %v1618_v14 = vadd.f32 %v1853_v13, %v1610_v43  ;;  %v1619_v17 = vadd.f32 %v1854_v15, %v1611_v12 }
 0x72d   : > { %v1626_v19 = vmax.f32 %v1618_v14, 0.0  ;;  %v1627_v20 = vmax.f32 %v1619_v17, 0.0 }
 0x72f   : > { %1634 = vst [vmem:[%s2374_s0] sm:$0xff] %v1626_v19  ;;  %1635 = vst [vmem:[%s2374_s0 + $0x8] sm:$0xff] %v1627_v20  ;;  %v1567_v56 = vpop.permute.xlu1 %1566 }
 0x730   : > { %v1578_v24 = vmul.f32 %v1567_v56, %v2267_v3  ;;  %v1579_v26 = vmul.f32 %v1567_v56, %v2269_v4  ;;  %v1856_v3 = vld [vmem:[%s2077_s27 + $0x18] sm:$0xff]  ;;  %s1935_s27 = smov [#allocation3]  }
 0x731   : > { %s1865_s20 = sshll.u32 %s1935_s27, 4  ;;  %s1866_s20 = int_to_ptr.vmem [resolvable:$false] %s1865_s20 }
 0x732   : > { %s1867_s2 = scalar_lea.vmem %s1866_s20, 2048  ;;  %p1868_p2 = scmp.lt.s32.totalorder %s2397_s26, %s1866_s20 }
 0x733   : > { %v1590_v27 = vpop.permute.xlu1 %1589  ;;  %v1595_v28 = vpop.permute.xlu0 %1594  ;;  %p1869_p3 = scmp.lt.s32.totalorder %s1867_s2, %s1861_s1 }
 0x734   : > { %v1604_v22 = vadd.f32 %v1590_v27, %v1576_v57  ;;  %v1605_v23 = vadd.f32 %v1590_v27, %v1577_v21  ;;  %v1606_v29 = vadd.f32 %v1595_v28, %v1578_v24  ;;  %v1607_v32 = vadd.f32 %v1595_v28, %v1579_v26 }
 0x735   : > { %p1870_p4 = por %p1869_p3, %p1868_p2 }
 0x736   : > { %v1612_v33 = vmax.f32 %v1604_v22, 0.0  ;;  %v1613_v34 = vmax.f32 %v1605_v23, 0.0  ;;  %v1614_v35 = vmax.f32 %v1606_v29, 0.0  ;;  %v1615_v36 = vmax.f32 %v1607_v32, 0.0 }
 0x737   : > { %v1572_v8 = vpop.permute.xlu1 %1571  ;;  %p1871_p5 = pnand %p1870_p4, %p1864_p1 }
 0x738   : > { %v1620_v30 = vadd.f32 %v1855_v62, %v1612_v33  ;;  %v1621_v4 = vadd.f32 %v1856_v3, %v1613_v34  ;;  %v1622_v39 = vadd.f32 %v1857_v31, %v1614_v35  ;;  %v1623_v41 = vadd.f32 %v1858_v40, %v1615_v36 }
 0x739   : > { %v1580_v42 = vmul.f32 %v1572_v8, %v2277_v9  ;;  %v1581_v44 = vmul.f32 %v1572_v8, %v2279_v11 }
 0x73a   : > { %v1628_v45 = vmax.f32 %v1620_v30, 0.0  ;;  %v1629_v46 = vmax.f32 %v1621_v4, 0.0  ;;  %v1630_v47 = vmax.f32 %v1622_v39, 0.0  ;;  %v1631_v50 = vmax.f32 %v1623_v41, 0.0 }
 0x73b   : > { %v1600_v16 = vpop.permute.xlu1 %1599 }
 0x73c   : > { %1636 = vst [vmem:[%s2374_s0 + $0x10] sm:$0xff] %v1628_v45  ;;  %1637 = vst [vmem:[%s2374_s0 + $0x18] sm:$0xff] %v1629_v46  ;;  %v1608_v25 = vadd.f32 %v1600_v16, %v1580_v42  ;;  %v1609_v51 = vadd.f32 %v1600_v16, %v1581_v44 }
 0x73d   : > { %1638 = vst [vmem:[%s2374_s0 + $0x20] sm:$0xff] %v1630_v47  ;;  %1639 = vst [vmem:[%s2374_s0 + $0x28] sm:$0xff] %v1631_v50 }
 0x73e   : > { %v1616_v9 = vmax.f32 %v1608_v25, 0.0  ;;  %v1617_v11 = vmax.f32 %v1609_v51, 0.0 }
 0x740   : > { %v1624_v53 = vadd.f32 %v1859_v52, %v1616_v9  ;;  %v1625_v48 = vadd.f32 %v1860_v54, %v1617_v11 }
 0x742   : > { %v1632_v49 = vmax.f32 %v1624_v53, 0.0  ;;  %v1633_v55 = vmax.f32 %v1625_v48, 0.0 }
 0x744   : > { %1640 = vst [vmem:[%s2374_s0 + $0x30] sm:$0xff] %v1632_v49  ;;  %1641 = vst [vmem:[%s2374_s0 + $0x38] sm:$0xff] %v1633_v55 }
 0x745   : > { %1874 = shalt.err (!%p1871_p5)
}
 0x746   : > { %s1875_s0 = scalar_lea.hbm %s2402_s28, 1024  ;;  %s1879_s18 = scalar_lea.hbm %s2465_s14, 2048 }
 0x747   : > { %p1876_p7 = scmp.ne.s32.totalorder %s2402_s28, %s1875_s0  ;;  %p1880_p12 = scmp.lt.u32.totalorder %s2402_s28, %s2465_s14 }
 0x748   : > { %p1881_p13 = scmp.lt.u32.totalorder %s1879_s18, %s1875_s0  ;;  %p1883_p1 = scmp.lt.u32.totalorder %s1875_s0, %s2402_s28 }
 0x749   : > { %p1877_p10 = pnand %p1876_p7, %p2051_p6 }
 0x74a   : > { %p1882_p0 = por %p1881_p13, %p1880_p12 }
 0x74b   : > { %p1878_p11 = pneg %p1877_p10 }
 0x74c   : > { %p1884_p2 = por %p1883_p1, %p1882_p0 }
 0x74e   : > { %p1885_p3 = pnand %p1884_p2, %p1878_p11 }
 0x750   : > { %1888 = shalt.err (!%p1885_p3)
}
 0x751   : > { %s1936_s2 = smov 256   ;;  %s1937_s1 = smov 512  }
 0x752   : > { %s2481_s27 = smov 16  }
 0x753   : > { %1776 = dma.vmem_to_hbm [thread:$0]  (%p2051_p6), %s2397_s26, 1024, %s2402_s28, %s2408_s17, %s1936_s2, %s1937_s1, %s2481_s27  }
 0x754 PF: > { %s1671_s4 = sand.u32 1, %s1911_s29   ;;  %p1779_p4 = pnand %p1726_p9, %p2055_p8 }
 0x755   : > { %s1672_s0 = scalar_lea.sflag [#allocation4], %s1671_s4 }
 0x756   : > { %1906 = dma.done.wait (!%p1779_p4), %s1672_s0, 1024  }
 0x757   : > { %1908 = vsyncadd (!%p1779_p4), %s1672_s0, 4294966272  ;;  %p24_p5 = scmp.ge.s32.totalorder %s2036_s19, 4   ;;  %s2482_s29 = smov %s1915_s30 }
 0x758   : > { %s2483_s30 = smov %s1919_s15  ;;  %s2484_s15 = smov %s2049_s22 }
 0x759   : > { %s2485_s16 = smov %s2036_s19  ;;  %26 = sbr.rel (!%p24_p5) target bundleno = 8 (0x8), region = 141 }
 0x760   :  { %1677 = vsyncpa [#allocation4], 1 }
 0x761   :  { %1679 = vsyncpa [#allocation4 + $0x1], 1 }

</bundles_post_ra>
